<compile_context>
chip_gen: v7x
topology: tpu7x:2x2x1
jax: 0.10.0
libtpu: 0.0.40
codegen_flags: <defaults>
</compile_context>

<pallas_src>
import jax
import jax.numpy as jnp
from jax.experimental import pallas as pl
from jax.experimental.pallas import tpu as pltpu


def _collapsed_mlp_kernel(x_ref, w_ref, b_ref, o_ref):
    # One MXU matmul per (tb, 640) f32 x-tile against the tiny resident
    # (640, 2) collapsed weight, f32 accumulation, + bias.
    acc = jnp.dot(x_ref[...], w_ref[...], preferred_element_type=jnp.float32)
    o_ref[...] = (acc + b_ref[...]).astype(o_ref.dtype)


def _round_up(n, m):
    return ((n + m - 1) // m) * m


# Conservative budget for the double-buffered f32 x tile so it fits under the
# smallest default scoped-VMEM limit (v5e: 16 MiB) without raising
# vmem_limit_bytes.  2 * tb * 640 * 4 B <= 12 MiB  ->  tb <= ~2456.
_X_STREAM_VMEM_BUDGET_BYTES = 12 * 1024 * 1024


def _run_kernel(x, w_eff, b_eff, tb):
    """Streaming x @ W_eff + b_eff over a batch that is a multiple of tb."""
    b_main, in_f = x.shape
    num_out = w_eff.shape[1]
    grid = (b_main // tb,)

    cost = pl.CostEstimate(
        flops=2 * b_main * in_f * num_out,
        transcendentals=0,
        bytes_accessed=(b_main * in_f * 4          # x (f32, read once)
                        + in_f * num_out * 4       # W_eff (f32, resident)
                        + num_out * 4              # b_eff
                        + b_main * num_out * 4),   # output (f32)
    )

    vmem = pltpu.MemorySpace.VMEM
    return pl.pallas_call(
        _collapsed_mlp_kernel,
        out_shape=jax.ShapeDtypeStruct((b_main, num_out), jnp.float32),
        grid=grid,
        in_specs=[
            # x streams tile-by-tile over the batch axis (double-buffered).
            pl.BlockSpec((tb, in_f), lambda i: (i, 0), memory_space=vmem),
            # Collapsed weight / bias stay resident across all grid steps.
            pl.BlockSpec((in_f, num_out), lambda i: (0, 0), memory_space=vmem),
            pl.BlockSpec((1, num_out), lambda i: (0, 0), memory_space=vmem),
        ],
        out_specs=pl.BlockSpec((tb, num_out), lambda i: (i, 0),
                               memory_space=vmem),
        compiler_params=pltpu.CompilerParams(
            dimension_semantics=("parallel",)),
        cost_estimate=cost,
    )(x, w_eff, b_eff)


def classifier_dgcdn_forward(x, w1, b1, w2, b2, *, tb=2048, use_kernel=None):
    """Forward pass of Classifier_DGCDN.

    x:  (B, 640) f32 feature vectors
    w1: (640, 300)  b1: (1, 300)   (weights stored as (in, out), i.e. torch W.T)
    w2: (300, 2)    b2: (1, 2)
    Returns (B, 2) f32 logits.
    """
    B, in_f = x.shape
    num_out = w2.shape[1]

    # --- Algebraic collapse of the two bias-only linears (f32). -------------
    w_eff = jnp.dot(w1, w2, preferred_element_type=jnp.float32)        # (640, 2)
    b_eff = jnp.dot(b1, w2, preferred_element_type=jnp.float32) + b2   # (1, 2)

    # --- Small-batch fast path: kernel fixed overhead would dominate. -------
    if use_kernel is None:
        use_kernel = B >= 4096
    if not use_kernel:
        return jnp.dot(x, w_eff, preferred_element_type=jnp.float32) + b_eff

    # --- Tile selection ------------------------------------------------------
    tb = max(8, (int(tb) // 8) * 8)                       # sublane multiple
    # VMEM-safe for the smallest default scoped limit (v5e 16 MiB) — also
    # fine on v7x (64 MiB phys / 32 MiB scoped) and v6e.
    tb_vmem_max = max(8, (_X_STREAM_VMEM_BUDGET_BYTES // (2 * in_f * 4)) // 8 * 8)
    tb = min(tb, tb_vmem_max)
    # Guarantee >= 2 grid steps so v7x's two TensorCores both get work.
    tb = min(tb, max(8, _round_up(pl.cdiv(B, 2), 8)))

    b_main = (B // tb) * tb
    if b_main == 0:
        # Batch smaller than one tile — nothing for the kernel to do.
        return jnp.dot(x, w_eff, preferred_element_type=jnp.float32) + b_eff

    out_main = _run_kernel(x[:b_main], w_eff, b_eff, tb)
    if b_main == B:
        return out_main

    # Ragged tail (< tb rows): plain jnp instead of padding the whole x array.
    out_tail = jnp.dot(x[b_main:], w_eff,
                       preferred_element_type=jnp.float32) + b_eff
    return jnp.concatenate([out_main, out_tail], axis=0)


def init_params(key):
    """nn.Linear default init: U(-1/sqrt(fan_in), 1/sqrt(fan_in)); stored as (in, out)."""
    k1, k2, k3, k4 = jax.random.split(key, 4)
    in1, out1 = 640, 300
    in2, out2 = 300, 2
    bound1 = 1.0 / jnp.sqrt(in1)
    bound2 = 1.0 / jnp.sqrt(in2)
    w1 = jax.random.uniform(k1, (in1, out1), jnp.float32, -bound1, bound1)
    b1 = jax.random.uniform(k2, (1, out1), jnp.float32, -bound1, bound1)
    w2 = jax.random.uniform(k3, (in2, out2), jnp.float32, -bound2, bound2)
    b2 = jax.random.uniform(k4, (1, out2), jnp.float32, -bound2, bound2)
    return w1, b1, w2, b2


if __name__ == "__main__":
    key = jax.random.PRNGKey(0)
    kx, kp = jax.random.split(key)
    w1, b1, w2, b2 = init_params(kp)

    def ref_f32(x):
        # Module semantics: full f32 two-linear forward.
        return (x @ w1 + b1) @ w2 + b2

    # (1) Kernel path, batch divisible by tile: B=512 -> tb clamps to 256,
    #     grid of 2 "parallel" steps.
    B = 512
    x = jax.random.normal(kx, (B, 640), jnp.float32)
    out = classifier_dgcdn_forward(x, w1, b1, w2, b2, use_kernel=True)
    out = jax.block_until_ready(out)
    assert out.shape == (B, 2)
    # Only difference vs the module is f32 reassociation of the collapse.
    assert jnp.allclose(out, ref_f32(x), atol=1e-3, rtol=1e-3)

    # (2) Kernel path with a ragged tail (B not a multiple of the tile).
    B2 = 300
    x2 = jax.random.normal(jax.random.fold_in(kx, 1), (B2, 640), jnp.float32)
    out2 = classifier_dgcdn_forward(x2, w1, b1, w2, b2, tb=128, use_kernel=True)
    out2 = jax.block_until_ready(out2)
    assert out2.shape == (B2, 2)
    assert jnp.allclose(out2, ref_f32(x2), atol=1e-3, rtol=1e-3)

    # (3) Small-batch fast path (no pallas_call).
    B3 = 32
    x3 = jax.random.normal(jax.random.fold_in(kx, 2), (B3, 640), jnp.float32)
    out3 = jax.block_until_ready(classifier_dgcdn_forward(x3, w1, b1, w2, b2))
    assert out3.shape == (B3, 2)
    assert jnp.allclose(out3, ref_f32(x3), atol=1e-3, rtol=1e-3)

    print("KERNEL_OK")
</pallas_src>

<mosaic_0001>
module attributes {stable_mosaic.version = 11 : i64} {
  func.func @_collapsed_mlp_kernel(%arg0: i32, %arg1: memref<256x640xf32, #tpu.memory_space<vmem>>, %arg2: memref<640x2xf32, #tpu.memory_space<vmem>>, %arg3: memref<1x2xf32, #tpu.memory_space<vmem>>, %arg4: memref<256x2xf32, #tpu.memory_space<vmem>>) attributes {dimension_semantics = [#tpu.dimension_semantics<parallel>], iteration_bounds = array<i64: 2>, scalar_prefetch = 0 : i64, scratch_operands = 0 : i64, tpu.core_type = #tpu.core_type<tc>, window_params = [{transform_indices = @transform_0, window_bounds = array<i64: 256, 640>}, {pipeline_mode = #tpu.pipeline_mode<synchronous>, transform_indices = @transform_1, window_bounds = array<i64: 640, 2>}, {pipeline_mode = #tpu.pipeline_mode<synchronous>, transform_indices = @transform_2, window_bounds = array<i64: 1, 2>}, {transform_indices = @transform_3, window_bounds = array<i64: 256, 2>}]} {
    %c0 = arith.constant 0 : index
    %c0_0 = arith.constant 0 : index
    %0 = vector.load %arg1[%c0, %c0_0] : memref<256x640xf32, #tpu.memory_space<vmem>>, vector<256x640xf32>
    %c0_1 = arith.constant 0 : index
    %c0_2 = arith.constant 0 : index
    %1 = vector.load %arg2[%c0_1, %c0_2] : memref<640x2xf32, #tpu.memory_space<vmem>>, vector<640x2xf32>
    %cst = arith.constant dense<0.000000e+00> : vector<256x2xf32>
    %2 = tpu.matmul %0, %1, %cst {dimension_numbers = #tpu.dot_dimension_numbers<[1], [0], [0], [1], [0, 0, 1, 1], [], []>} : vector<256x640xf32>, vector<640x2xf32>, vector<256x2xf32> -> vector<256x2xf32>
    %c0_3 = arith.constant 0 : index
    %c0_4 = arith.constant 0 : index
    %3 = vector.load %arg3[%c0_3, %c0_4] : memref<1x2xf32, #tpu.memory_space<vmem>>, vector<1x2xf32>
    %4 = vector.broadcast %3 : vector<1x2xf32> to vector<256x2xf32>
    %5 = arith.addf %2, %4 : vector<256x2xf32>
    %c0_5 = arith.constant 0 : index
    %c0_6 = arith.constant 0 : index
    %6 = vector.load %arg4[%c0_5, %c0_6] : memref<256x2xf32, #tpu.memory_space<vmem>>, vector<256x2xf32>
    tpu.vector_store %arg4[%c0_5, %c0_6], %5 {strides = array<i32>} : memref<256x2xf32, #tpu.memory_space<vmem>>, vector<256x2xf32>,
    return
  }
  func.func @transform_0(%arg0: i32) -> (i32, i32) {
    %c0_i32 = arith.constant 0 : i32
    %c0_i32_0 = arith.constant 0 : i32
    return %arg0, %c0_i32 : i32, i32
  }
  func.func @transform_1(%arg0: i32) -> (i32, i32) {
    %c0_i32 = arith.constant 0 : i32
    %c0_i32_0 = arith.constant 0 : i32
    %c0_i32_1 = arith.constant 0 : i32
    return %c0_i32, %c0_i32_0 : i32, i32
  }
  func.func @transform_2(%arg0: i32) -> (i32, i32) {
    %c0_i32 = arith.constant 0 : i32
    %c0_i32_0 = arith.constant 0 : i32
    %c0_i32_1 = arith.constant 0 : i32
    return %c0_i32, %c0_i32_0 : i32, i32
  }
  func.func @transform_3(%arg0: i32) -> (i32, i32) {
    %c0_i32 = arith.constant 0 : i32
    %c0_i32_0 = arith.constant 0 : i32
    return %arg0, %c0_i32 : i32, i32
  }
}

</mosaic_0001>

<bundles_post_ra>
// kernel: tpu_custom_call.1
= control target key start
LH: loop header
LB: loop body
LE: loop exit
PB: predicated region body
PF: predicated region fallthrough
CT: control target
= control target key end

     0   :  { %8 = vsyncpa [#allocation3], 0  ;;  %s2660_s0 = inlined_call_operand.hbm [shape: f32[512,640], index: 0, kind: input, shape index: {}]   ;;  %s2661_s1 = inlined_call_operand.vmem [shape: f32[640,2], index: 1, kind: input, shape index: {}]   ;;  %s2662_s2 = inlined_call_operand.hbm [shape: f32[1,2], index: 2, kind: input, shape index: {}]   ;;  %s2663_s3 = inlined_call_operand.vmem [shape: f32[512,2], index: 3, kind: output, shape index: {}]  }
   0x1   :  { %10 = vsyncpa [#allocation3 + $0x1], 0 }
   0x2   :  { %11 = vsyncpa [#allocation5], 0  ;;  %s1793_s12 = smov 0   ;;  %s1795_s13 = smov 0  }
   0x3   :  { %s1797_s14 = smov 0   ;;  %s1799_s15 = smov 0  }
   0x4 LB: > { %s1239_s16 = sadd.s32 4294967295, %s1766_s15   ;;  %s1813_s17 = sadd.s32 1, %s1766_s15   ;;  %s1766_s15 = sphi %s1799_s15, %s2682_s15   ;;  %s1762_s14 = sphi %s1797_s14, %s2681_s14   ;;  %s1758_s13 = sphi %s1795_s13, %s2680_s13   ;;  %s1754_s12 = sphi %s1793_s12, %s2679_s12  }
   0x5   : > { %s21_s18 = ssub.s32 %s1766_s15, %s1813_s17  ;;  %s24_s19 = sadd.s32 1, %s1762_s14 }
   0x6   : > { %p22_p0 = scmp.eq.s32.totalorder %s21_s18, 0  ;;  %p31_p1 = scmp.ne.s32.totalorder %s1762_s14, %s1758_s13 }
   0x7   : > { %p32_p2 = scmp.eq.s32.totalorder %s1766_s15, 0  ;;  %p37_p3 = scmp.ne.s32.totalorder %s1758_s13, %s1754_s12 }
   0x8   : > { %s1823_s20 = scalar_select %p22_p0, %s1762_s14, %s24_s19  }
   0x9   : > { %p1825_p4 = por %p32_p2, %p31_p1  ;;  %p1831_p5 = scmp.eq.s32.totalorder %s1239_s16, 0 }
   0xa   : > { %p1241_p6 = scmp.ge.s32.totalorder %s1766_s15, 1  ;;  %p116_p7 = scmp.lt.s32.totalorder %s1766_s15, 3 }
   0xb   : > { %s2670_s22 = scalar_select %p1831_p5, 1, 0 }
   0xc   : > { %p1839_p8 = por %p1831_p5, %p37_p3  ;;  %p1843_p9 = pnand %p1241_p6, %p116_p7 }
   0xd   : > { %s1768_s25 = smov [#allocation4]   ;;  %p1632_p11 = scmp.lt.s32.totalorder %s1766_s15, 2 }
   0xe   : > { %s2671_s23 = scalar_select %p1839_p8, 1, 0 }
   0xf   : > { %s2672_s24 = scalar_select %p1843_p9, 1, 0 }
  0x10   : > { %s132_s26 = sshll.u32 %s1768_s25, 4  ;;  %p1623_p10 = pneg %p1843_p9  ;;  %s133_s26 = int_to_ptr.vmem [resolvable:$true] %s132_s26 }
  0x11   : > { %s143_s27 = sand.u32 1, %s1762_s14   ;;  %p1859_p13 = pnand %p1632_p11, %p1825_p4 }
  0x12   : > { %p1853_p12 = pnand %p1623_p10, %p1831_p5  ;;  %s1614_s30 = smul.u32 1280, %s143_s27 }
  0x13   : > { %s2674_s29 = scalar_select %p1859_p13, 1, 0 }
  0x14   : > { %s1615_s4 = smul.u32 20480, %s1766_s15  ;;  %s1670_s7 = scalar_lea.hbm %s2662_s2, 16 }
  0x15   : > { %p1671_p0 = scmp.ne.s32.totalorder %s2662_s2, %s1670_s7  ;;  %p1672_p1 = pneg %p1853_p12 }
  0x16   : > { %p1677_p4 = scmp.lt.u32.totalorder %s1670_s7, %s2662_s2 }
  0x17   : > { %p1673_p2 = pnand %p1672_p1, %p1671_p0 }
  0x19   : > { %p1674_p3 = pneg %p1673_p2 }
  0x1b   : > { %p1679_p6 = pnand %p1677_p4, %p1674_p3 }
  0x1d   : > { %1682 = shalt.err (!%p1679_p6)
}
  0x1e   : > { %s1683_s12 = scalar_lea.vmem %s133_s26, 16  ;;  %s1690_s18 = scalar_lea.vmem %s133_s26, 32 }
  0x1f   : > { %p1684_p7 = scmp.ne.s32.totalorder %s133_s26, %s1683_s12  ;;  %p1691_p5 = scmp.lt.s32.totalorder %s133_s26, %s133_s26 }
  0x20   : > { %p1692_p8 = scmp.lt.s32.totalorder %s1690_s18, %s1683_s12 }
  0x21   : > { %p1686_p10 = pnand %p1684_p7, %p1672_p1 }
  0x22   : > { %p1693_p9 = por %p1692_p8, %p1691_p5 }
  0x23   : > { %p1687_p11 = pneg %p1686_p10 }
  0x25   : > { %p1694_p13 = pnand %p1693_p9, %p1687_p11 }
  0x27   : > { %1697 = shalt.err (!%p1694_p13)
}
  0x28   : > { %1626 = dma.hbm_to_vmem [thread:$0]  (!%p1853_p12), %s2662_s2, 16, %s133_s26, [#allocation5]  }
  0x29   : > { %s1883_s6 = scalar_lea.hbm %s2660_s0, %s1615_s4  ;;  %s147_s7 = scalar_lea.vmem [#allocation2], %s1614_s30 }
  0x2a   : > { %s155_s8 = sshll.u32 %s147_s7, 4  ;;  %s1887_s28 = scalar_lea.sflag [#allocation3], %s143_s27  ;;  %s1885_s8 = int_to_ptr.vmem [resolvable:$true] %s155_s8 }
  0x2b   : > { %s1698_s9 = scalar_lea.hbm %s1883_s6, 20480  ;;  %p2675_p8 = scmp.ne.s32.totalorder %s2674_s29, 0 }
  0x2c   : > { %p1699_p5 = scmp.ne.s32.totalorder %s1883_s6, %s1698_s9  ;;  %s1703_s10 = scalar_lea.hbm %s2660_s0, 40960 }
  0x2d   : > { %p1700_p9 = pneg %p2675_p8  ;;  %p1704_p0 = scmp.lt.u32.totalorder %s1883_s6, %s2660_s0 }
  0x2e   : > { %p1705_p1 = scmp.lt.u32.totalorder %s1703_s10, %s1698_s9  ;;  %p1707_p3 = scmp.lt.u32.totalorder %s1698_s9, %s1883_s6 }
  0x2f   : > { %p1701_p12 = pnand %p1700_p9, %p1699_p5 }
  0x30   : > { %p1706_p2 = por %p1705_p1, %p1704_p0 }
  0x31   : > { %p1702_p13 = pneg %p1701_p12 }
  0x32   : > { %p1708_p4 = por %p1707_p3, %p1706_p2 }
  0x34   : > { %p1709_p6 = pnand %p1708_p4, %p1702_p13 }
  0x36   : > { %1712 = shalt.err (!%p1709_p6)
}
  0x37   : > { %s1713_s27 = scalar_lea.vmem %s1885_s8, 20480  ;;  %s1769_s30 = smov [#allocation2]  }
  0x38   : > { %p1714_p7 = scmp.ne.s32.totalorder %s1885_s8, %s1713_s27  ;;  %s1718_s18 = sshll.u32 %s1769_s30, 4  ;;  %s1719_s18 = int_to_ptr.vmem [resolvable:$false] %s1718_s18 }
  0x39   : > { %s1720_s19 = scalar_lea.vmem %s1719_s18, 40960  ;;  %p1721_p5 = scmp.lt.s32.totalorder %s1885_s8, %s1719_s18 }
  0x3a   : > { %p1716_p10 = pnand %p1714_p7, %p1700_p9  ;;  %p1722_p12 = scmp.lt.s32.totalorder %s1720_s19, %s1713_s27 }
  0x3c   : > { %p1717_p11 = pneg %p1716_p10  ;;  %p1723_p0 = por %p1722_p12, %p1721_p5 }
  0x3e   : > { %p1724_p1 = pnand %p1723_p0, %p1717_p11 }
  0x40   : > { %1727 = shalt.err (!%p1724_p1)
}
  0x41   : > { %s1770_s21 = smov 640   ;;  %s1771_s25 = smov 40  }
  0x42   : > { %1630 = dma.hbm_to_vmem [thread:$0]  (!%p2675_p8), %s1883_s6, 20480, %s1885_s8, %s1887_s28, %s1770_s21, %s1770_s21, %s1771_s25  }
  0x43   : > { %p2676_p9 = scmp.ne.s32.totalorder %s2672_s24, 0 }
  0x44   : > { %s169_s5 = sand.u32 (!%p2676_p9), 1, %s1758_s13   ;;  %p2677_p13 = scmp.ne.s32.totalorder (!%p2676_p9), %s2671_s23, 0 }
  0x45   : > { %167 = sbr.rel (%p2676_p9) target bundleno = 519 (0x207), region = 32  ;;  %s170_s9 = scalar_lea.sflag (!%p2676_p9), [#allocation3], %s169_s5 }
  0x46   : > { %s1616_s7 = smul.u32 (!%p2676_p9), 1280, %s169_s5 }
  0x48   : > { %s1918_s26 = scalar_lea.vmem (!%p2676_p9), [#allocation2], %s1616_s7 }
  0x4c   : > { %1745 = dma.done.wait (%p2677_p13), %s170_s9, 20480  }
  0x4d   : > { %1747 = vsyncadd (%p2677_p13), %s170_s9, 4294946816  ;;  %p2678_p2 = scmp.ne.s32.totalorder %s2670_s22, 0 }
  0x4f   : > { %1749 = dma.done.wait (%p2678_p2), [#allocation5], 16  }
  0x50   : > { %1751 = vsyncadd (%p2678_p2), [#allocation5], 4294967280  ;;  %v1772_v0 = vmov 0.0|0.0   ;;  %v367_v1 = vld [vmem:[%s2661_s1] sm:$0xff]  ;;  %v368_v2 = vld [vmem:[%s2661_s1 + $0x8] sm:$0xff]  ;;  %vm1129_vm0 = vcmask 15360  }
  0x51   : > { %1382 = vmatprep.subr.bf16.mxu0 %v1772_v0  ;;  %1510 = vmatprep.subr.bf16.mxu1 %v1772_v0  ;;  %v399_v3 = vld [vmem:[%s2661_s1 + $0x100] sm:$0xff]  ;;  %v1383_v4 = vpack.c.bf16 %v368_v2, %v367_v1  ;;  %v400_v5 = vld [vmem:[%s2661_s1 + $0x108] sm:$0xff]  ;;  %v369_v6 = vld [vmem:[%s2661_s1 + $0x10] sm:$0xff] }
  0x52   : > { %v370_v7 = vld [vmem:[%s2661_s1 + $0x18] sm:$0xff]  ;;  %v1948_v8 = vpack.c.bf16 %v400_v5, %v399_v3  ;;  %v401_v9 = vld [vmem:[%s2661_s1 + $0x110] sm:$0xff]  ;;  %v371_v13 = vld [vmem:[%s2661_s1 + $0x20] sm:$0xff] }
  0x53   : > { %v402_v10 = vld [vmem:[%s2661_s1 + $0x118] sm:$0xff]  ;;  %1384 = vmatpush1.bf16.msra.mxu0 %v1383_v4  ;;  %v1386_v11 = vpack.c.bf16 %v370_v7, %v369_v6  ;;  %v372_v14 = vld [vmem:[%s2661_s1 + $0x28] sm:$0xff]  ;;  %v403_v15 = vld [vmem:[%s2661_s1 + $0x120] sm:$0xff] }
  0x54   : > { %1526 = vmatpush1.bf16.msra.mxu1 %v1948_v8  ;;  %1385 = vmatprep.subr.bf16.mxu0 %v1772_v0  ;;  %v1958_v12 = vpack.c.bf16 %v402_v10, %v401_v9  ;;  %v404_v16 = vld [vmem:[%s2661_s1 + $0x128] sm:$0xff]  ;;  %v1389_v17 = vpack.c.bf16 %v372_v14, %v371_v13  ;;  %v373_v19 = vld [vmem:[%s2661_s1 + $0x30] sm:$0xff]  ;;  %v374_v20 = vld [vmem:[%s2661_s1 + $0x38] sm:$0xff] }
  0x55   : > { %1511 = vmatprep.subr.bf16.mxu1 %v1772_v0  ;;  %v1975_v18 = vpack.c.bf16 %v404_v16, %v403_v15  ;;  %v405_v21 = vld [vmem:[%s2661_s1 + $0x130] sm:$0xff]  ;;  %v406_v22 = vld [vmem:[%s2661_s1 + $0x138] sm:$0xff]  ;;  %v1392_v23 = vpack.c.bf16 %v374_v20, %v373_v19  ;;  %v375_v25 = vld [vmem:[%s2661_s1 + $0x40] sm:$0xff] }
  0x56   : > { %v1992_v24 = vpack.c.bf16 %v406_v22, %v405_v21  ;;  %v376_v26 = vld [vmem:[%s2661_s1 + $0x48] sm:$0xff]  ;;  %v407_v27 = vld [vmem:[%s2661_s1 + $0x140] sm:$0xff]  ;;  %v377_v31 = vld [vmem:[%s2661_s1 + $0x50] sm:$0xff] }
  0x57   : > { %1387 = vmatpush1.bf16.msra.mxu0 %v1386_v11  ;;  %v408_v28 = vld [vmem:[%s2661_s1 + $0x148] sm:$0xff]  ;;  %v1395_v29 = vpack.c.bf16 %v376_v26, %v375_v25  ;;  %v378_v32 = vld [vmem:[%s2661_s1 + $0x58] sm:$0xff]  ;;  %v409_v33 = vld [vmem:[%s2661_s1 + $0x150] sm:$0xff] }
  0x58   : > { %1527 = vmatpush1.bf16.msra.mxu1 %v1958_v12  ;;  %1388 = vmatprep.subr.bf16.mxu0 %v1772_v0  ;;  %v2009_v30 = vpack.c.bf16 %v408_v28, %v407_v27  ;;  %v410_v34 = vld [vmem:[%s2661_s1 + $0x158] sm:$0xff]  ;;  %v1398_v35 = vpack.c.bf16 %v378_v32, %v377_v31  ;;  %v379_v37 = vld [vmem:[%s2661_s1 + $0x60] sm:$0xff]  ;;  %v380_v38 = vld [vmem:[%s2661_s1 + $0x68] sm:$0xff] }
  0x59   : > { %1512 = vmatprep.subr.bf16.mxu1 %v1772_v0  ;;  %v2026_v36 = vpack.c.bf16 %v410_v34, %v409_v33  ;;  %v411_v39 = vld [vmem:[%s2661_s1 + $0x160] sm:$0xff]  ;;  %v412_v40 = vld [vmem:[%s2661_s1 + $0x168] sm:$0xff]  ;;  %v250_v42 = vld [vmem:[%s1918_s26 + $0x158] sm:$0xff]  ;;  %v1401_v43 = vpack.c.bf16 %v380_v38, %v379_v37 }
  0x5a   : > { %v208_v41 = vld [vmem:[%s1918_s26 + $0x8] sm:$0xff]  ;;  %783 = vmatprep.mubr.f32.mxu1 %v250_v42  ;;  %v2045_v44 = vpack.c.bf16 %v412_v40, %v411_v39  ;;  %v381_v45 = vld [vmem:[%s2661_s1 + $0x70] sm:$0xff]  ;;  %v382_v46 = vld [vmem:[%s2661_s1 + $0x78] sm:$0xff] }
  0x5b   : > { %1390 = vmatpush1.bf16.msra.mxu0 %v1389_v17  ;;  %518 = vmatprep.mubr.f32.mxu0 %v208_v41  ;;  %v413_v47 = vld [vmem:[%s2661_s1 + $0x170] sm:$0xff]  ;;  %v414_v48 = vld [vmem:[%s2661_s1 + $0x178] sm:$0xff]  ;;  %v1404_v49 = vpack.c.bf16 %v382_v46, %v381_v45  ;;  %v383_v51 = vld [vmem:[%s2661_s1 + $0x80] sm:$0xff] }
  0x5c   : > { %1528 = vmatpush1.bf16.msra.mxu1 %v1975_v18  ;;  %1391 = vmatprep.subr.bf16.mxu0 %v1772_v0  ;;  %v2062_v50 = vpack.c.bf16 %v414_v48, %v413_v47  ;;  %v384_v52 = vld [vmem:[%s2661_s1 + $0x88] sm:$0xff]  ;;  %v415_v53 = vld [vmem:[%s2661_s1 + $0x180] sm:$0xff]  ;;  %v385_v57 = vld [vmem:[%s2661_s1 + $0x90] sm:$0xff] }
  0x5d   : > { %1513 = vmatprep.subr.bf16.mxu1 %v1772_v0  ;;  %v416_v54 = vld [vmem:[%s2661_s1 + $0x188] sm:$0xff]  ;;  %v1407_v55 = vpack.c.bf16 %v384_v52, %v383_v51  ;;  %v386_v58 = vld [vmem:[%s2661_s1 + $0x98] sm:$0xff]  ;;  %v417_v59 = vld [vmem:[%s2661_s1 + $0x190] sm:$0xff] }
  0x5e   : > { %v2079_v56 = vpack.c.bf16 %v416_v54, %v415_v53  ;;  %v418_v60 = vld [vmem:[%s2661_s1 + $0x198] sm:$0xff]  ;;  %v1410_v61 = vpack.c.bf16 %v386_v58, %v385_v57  ;;  %v387_v63 = vld [vmem:[%s2661_s1 + $0xa0] sm:$0xff]  ;;  %v388_v1 = vld [vmem:[%s2661_s1 + $0xa8] sm:$0xff] }
  0x5f   : > { %1393 = vmatpush1.bf16.msra.mxu0 %v1392_v23  ;;  %v2096_v62 = vpack.c.bf16 %v418_v60, %v417_v59  ;;  %v419_v2 = vld [vmem:[%s2661_s1 + $0x1a0] sm:$0xff]  ;;  %v420_v3 = vld [vmem:[%s2661_s1 + $0x1a8] sm:$0xff]  ;;  %v1413_v4 = vpack.c.bf16 %v388_v1, %v387_v63  ;;  %v389_v6 = vld [vmem:[%s2661_s1 + $0xb0] sm:$0xff] }
  0x60   : > { %1529 = vmatpush1.bf16.msra.mxu1 %v1992_v24  ;;  %1394 = vmatprep.subr.bf16.mxu0 %v1772_v0  ;;  %v2113_v5 = vpack.c.bf16 %v420_v3, %v419_v2  ;;  %v390_v7 = vld [vmem:[%s2661_s1 + $0xb8] sm:$0xff]  ;;  %v421_v9 = vld [vmem:[%s2661_s1 + $0x1b0] sm:$0xff]  ;;  %v391_v14 = vld [vmem:[%s2661_s1 + $0xc0] sm:$0xff] }
  0x61   : > { %1514 = vmatprep.subr.bf16.mxu1 %v1772_v0  ;;  %v422_v10 = vld [vmem:[%s2661_s1 + $0x1b8] sm:$0xff]  ;;  %v1416_v11 = vpack.c.bf16 %v390_v7, %v389_v6  ;;  %v392_v15 = vld [vmem:[%s2661_s1 + $0xc8] sm:$0xff]  ;;  %v423_v16 = vld [vmem:[%s2661_s1 + $0x1c0] sm:$0xff] }
  0x62   : > { %v2130_v13 = vpack.c.bf16 %v422_v10, %v421_v9  ;;  %v424_v17 = vld [vmem:[%s2661_s1 + $0x1c8] sm:$0xff]  ;;  %v1419_v19 = vpack.c.bf16 %v392_v15, %v391_v14  ;;  %v393_v21 = vld [vmem:[%s2661_s1 + $0xd0] sm:$0xff]  ;;  %v394_v22 = vld [vmem:[%s2661_s1 + $0xd8] sm:$0xff] }
  0x63   : > { %1396 = vmatpush1.bf16.msra.mxu0 %v1395_v29  ;;  %v2147_v20 = vpack.c.bf16 %v424_v17, %v423_v16  ;;  %v425_v23 = vld [vmem:[%s2661_s1 + $0x1d0] sm:$0xff]  ;;  %v426_v25 = vld [vmem:[%s2661_s1 + $0x1d8] sm:$0xff]  ;;  %v1422_v26 = vpack.c.bf16 %v394_v22, %v393_v21  ;;  %v395_v28 = vld [vmem:[%s2661_s1 + $0xe0] sm:$0xff] }
  0x64   : > { %1530 = vmatpush1.bf16.msra.mxu1 %v2009_v30  ;;  %1397 = vmatprep.subr.bf16.mxu0 %v1772_v0  ;;  %v2164_v27 = vpack.c.bf16 %v426_v25, %v425_v23  ;;  %v396_v29 = vld [vmem:[%s2661_s1 + $0xe8] sm:$0xff]  ;;  %v427_v31 = vld [vmem:[%s2661_s1 + $0x1e0] sm:$0xff]  ;;  %v398_v37 = vld [vmem:[%s2661_s1 + $0xf8] sm:$0xff] }
  0x65   : > { %1515 = vmatprep.subr.bf16.mxu1 %v1772_v0  ;;  %v428_v32 = vld [vmem:[%s2661_s1 + $0x1e8] sm:$0xff]  ;;  %v1425_v33 = vpack.c.bf16 %v396_v29, %v395_v28  ;;  %v429_v38 = vld [vmem:[%s2661_s1 + $0x1f0] sm:$0xff]  ;;  %v430_v39 = vld [vmem:[%s2661_s1 + $0x1f8] sm:$0xff] }
  0x66   : > { %v2181_v34 = vpack.c.bf16 %v428_v32, %v427_v31  ;;  %v431_v40 = vld [vmem:[%s2661_s1 + $0x200] sm:$0xff]  ;;  %v432_v41 = vld [vmem:[%s2661_s1 + $0x208] sm:$0xff]  ;;  %v433_v47 = vld [vmem:[%s2661_s1 + $0x210] sm:$0xff] }
  0x67   : > { %1399 = vmatpush1.bf16.msra.mxu0 %v1398_v35  ;;  %v397_v35 = vld [vmem:[%s2661_s1 + $0xf0] sm:$0xff]  ;;  %v1478_v45 = vpack.c.bf16 %v432_v41, %v431_v40  ;;  %v207_v46 = vld [vmem:[%s1918_s26] sm:$0xff]  ;;  %v434_v48 = vld [vmem:[%s2661_s1 + $0x218] sm:$0xff] }
  0x68   : > { %1531 = vmatpush1.bf16.msra.mxu1 %v2026_v36  ;;  %1400 = vmatprep.subr.bf16.mxu0 %v1772_v0  ;;  %v1428_v42 = vpack.c.bf16 %v398_v37, %v397_v35  ;;  %v213_v51 = vld [vmem:[%s1918_s26 + $0x30] sm:$0xff]  ;;  %v255_v52 = vld [vmem:[%s1918_s26 + $0x180] sm:$0xff]  ;;  %v1482_v53 = vpack.c.bf16 %v434_v48, %v433_v47  ;;  %v212_v54 = vld [vmem:[%s1918_s26 + $0x28] sm:$0xff] }
  0x69   : > { %1516 = vmatprep.subr.bf16.mxu1 %v1772_v0  ;;  %v436_v57 = vld [vmem:[%s2661_s1 + $0x228] sm:$0xff]  ;;  %v254_v58 = vld [vmem:[%s1918_s26 + $0x178] sm:$0xff]  ;;  %v437_v63 = vld [vmem:[%s2661_s1 + $0x230] sm:$0xff] }
  0x6a   : > { %v218_v59 = vld [vmem:[%s1918_s26 + $0x58] sm:$0xff]  ;;  %v260_v60 = vld [vmem:[%s1918_s26 + $0x1a8] sm:$0xff]  ;;  %v259_v2 = vld [vmem:[%s1918_s26 + $0x1a0] sm:$0xff] }
  0x6b   : > { %1402 = vmatpush1.bf16.msra.mxu0 %v1401_v43  ;;  %v2204_v43 = vpack.c.bf16 %v430_v39, %v429_v38  ;;  %v438_v1 = vld [vmem:[%s2661_s1 + $0x238] sm:$0xff]  ;;  %v223_v3 = vld [vmem:[%s1918_s26 + $0x80] sm:$0xff]  ;;  %v264_v10 = vld [vmem:[%s1918_s26 + $0x1c8] sm:$0xff] }
  0x6c   : > { %1532 = vmatpush1.bf16.msra.mxu1 %v2045_v44  ;;  %1403 = vmatprep.subr.bf16.mxu0 %v1772_v0  ;;  %v1490_v6 = vpack.c.bf16 %v438_v1, %v437_v63  ;;  %v222_v7 = vld [vmem:[%s1918_s26 + $0x78] sm:$0xff]  ;;  %v439_v9 = vld [vmem:[%s2661_s1 + $0x240] sm:$0xff]  ;;  %v441_v17 = vld [vmem:[%s2661_s1 + $0x250] sm:$0xff] }
  0x6d   : > { %1517 = vmatprep.subr.bf16.mxu1 %v1772_v0  ;;  %v270_v14 = vld [vmem:[%s1918_s26 + $0x1f8] sm:$0xff]  ;;  %v227_v16 = vld [vmem:[%s1918_s26 + $0xa0] sm:$0xff]  ;;  %v233_v21 = vld [vmem:[%s1918_s26 + $0xd0] sm:$0xff] }
  0x6e   : > { %v275_v22 = vld [vmem:[%s1918_s26 + $0x220] sm:$0xff]  ;;  %v232_v25 = vld [vmem:[%s1918_s26 + $0xc8] sm:$0xff]  ;;  %v274_v28 = vld [vmem:[%s1918_s26 + $0x218] sm:$0xff] }
  0x6f   : > { %1405 = vmatpush1.bf16.msra.mxu0 %v1404_v49  ;;  %v249_v49 = vld [vmem:[%s1918_s26 + $0x150] sm:$0xff]  ;;  %v238_v29 = vld [vmem:[%s1918_s26 + $0xf8] sm:$0xff]  ;;  %v280_v31 = vld [vmem:[%s1918_s26 + $0x248] sm:$0xff] }
  0x70   : > { %1533 = vmatpush1.bf16.msra.mxu1 %v2062_v50  ;;  %1406 = vmatprep.subr.bf16.mxu0 %v1772_v0  ;;  %v445_v35 = vld [vmem:[%s2661_s1 + $0x270] sm:$0xff]  ;;  %v279_v37 = vld [vmem:[%s1918_s26 + $0x240] sm:$0xff]  ;;  %v242_v41 = vld [vmem:[%s1918_s26 + $0x118] sm:$0xff] }
  0x71   : > { %1518 = vmatprep.subr.bf16.mxu1 %v1772_v0  ;;  %v243_v38 = vld [vmem:[%s1918_s26 + $0x120] sm:$0xff]  ;;  %v285_v39 = vld [vmem:[%s1918_s26 + $0x270] sm:$0xff]  ;;  %v314_v1 = vld [vmem:[%s1918_s26 + $0x358] sm:$0xff] }
  0x72   : > { %v289_v47 = vld [vmem:[%s1918_s26 + $0x290] sm:$0xff]  ;;  %v315_v63 = vld [vmem:[%s1918_s26 + $0x360] sm:$0xff] }
  0x73   : > { %1408 = vmatpush1.bf16.msra.mxu0 %v1407_v55  ;;  %v435_v55 = vld [vmem:[%s2661_s1 + $0x220] sm:$0xff]  ;;  %v253_v48 = vld [vmem:[%s1918_s26 + $0x170] sm:$0xff] }
  0x74   : > { %1534 = vmatpush1.bf16.msra.mxu1 %v2079_v56  ;;  %1409 = vmatprep.subr.bf16.mxu0 %v1772_v0 }
  0x75   : > { %1519 = vmatprep.subr.bf16.mxu1 %v1772_v0 }
  0x77   : > { %1411 = vmatpush1.bf16.msra.mxu0 %v1410_v61  ;;  %v217_v61 = vld [vmem:[%s1918_s26 + $0x50] sm:$0xff] }
  0x78   : > { %1535 = vmatpush1.bf16.msra.mxu1 %v2096_v62  ;;  %1412 = vmatprep.subr.bf16.mxu0 %v1772_v0 }
  0x79   : > { %1520 = vmatprep.subr.bf16.mxu1 %v1772_v0 }
  0x7b   : > { %1414 = vmatpush1.bf16.msra.mxu0 %v1413_v4  ;;  %v265_v4 = vld [vmem:[%s1918_s26 + $0x1d0] sm:$0xff] }
  0x7c   : > { %1536 = vmatpush1.bf16.msra.mxu1 %v2113_v5  ;;  %1415 = vmatprep.subr.bf16.mxu0 %v1772_v0 }
  0x7d   : > { %1521 = vmatprep.subr.bf16.mxu1 %v1772_v0 }
  0x7f   : > { %1417 = vmatpush1.bf16.msra.mxu0 %v1416_v11  ;;  %v228_v11 = vld [vmem:[%s1918_s26 + $0xa8] sm:$0xff] }
  0x80   : > { %1537 = vmatpush1.bf16.msra.mxu1 %v2130_v13  ;;  %1418 = vmatprep.subr.bf16.mxu0 %v1772_v0 }
  0x81   : > { %1522 = vmatprep.subr.bf16.mxu1 %v1772_v0 }
  0x83   : > { %1420 = vmatpush1.bf16.msra.mxu0 %v1419_v19  ;;  %v269_v19 = vld [vmem:[%s1918_s26 + $0x1f0] sm:$0xff] }
  0x84   : > { %1538 = vmatpush1.bf16.msra.mxu1 %v2147_v20  ;;  %1421 = vmatprep.subr.bf16.mxu0 %v1772_v0 }
  0x85   : > { %1523 = vmatprep.subr.bf16.mxu1 %v1772_v0 }
  0x87   : > { %1423 = vmatpush1.bf16.msra.mxu0 %v1422_v26  ;;  %v443_v26 = vld [vmem:[%s2661_s1 + $0x260] sm:$0xff] }
  0x88   : > { %1539 = vmatpush1.bf16.msra.mxu1 %v2164_v27  ;;  %1424 = vmatprep.subr.bf16.mxu0 %v1772_v0 }
  0x89   : > { %1524 = vmatprep.subr.bf16.mxu1 %v1772_v0 }
  0x8b   : > { %1426 = vmatpush1.bf16.msra.mxu0 %v1425_v33  ;;  %v237_v33 = vld [vmem:[%s1918_s26 + $0xf0] sm:$0xff] }
  0x8c   : > { %1540 = vmatpush1.bf16.msra.mxu1 %v2181_v34  ;;  %1427 = vmatprep.subr.bf16.mxu0 %v1772_v0 }
  0x8d   : > { %1525 = vmatprep.subr.bf16.mxu1 %v1772_v0 }
  0x8f   : > { %1429 = vmatpush1.bf16.msra.mxu0 %v1428_v42  ;;  %v284_v42 = vld [vmem:[%s1918_s26 + $0x268] sm:$0xff] }
  0x90   : > { %1541 = vmatpush1.bf16.msra.mxu1 %v2204_v43  ;;  %1430 = vmatprep.subr.bf16.mxu0 %v1772_v0 }
  0x91   : > { %1479 = vmatprep.subr.bf16.mxu1 %v1478_v45 }
  0x92   : > { %519 = vmatmul.mubr.f32.vlgmr.msra.gmra.mrb[0].mxu0 %v207_v46  ;;  %v247_v46 = vld [vmem:[%s1918_s26 + $0x140] sm:$0xff] }
  0x93   : > { %784 = vmatmul.mubr.f32.vlgmr.msra.gmra.mrb[0].mxu1 %v249_v49  ;;  %1432 = vmatpush1.bf16.msra.mxu0 %v1948_v8  ;;  %v1486_v8 = vpack.c.bf16 %v436_v57, %v435_v55  ;;  %v295_v49 = vld [vmem:[%s1918_s26 + $0x2c0] sm:$0xff]  ;;  %v305_v57 = vld [vmem:[%s1918_s26 + $0x310] sm:$0xff] }
  0x94   : > { %1481 = vmatpush3.bf16.msra.mxu1 %v1478_v45  ;;  %523 = vmatprep.mubr.f32.mxu0 %v213_v51  ;;  %v248_v45 = vld [vmem:[%s1918_s26 + $0x148] sm:$0xff]  ;;  %v294_v51 = vld [vmem:[%s1918_s26 + $0x2b8] sm:$0xff]  ;;  %v263_v55 = vld [vmem:[%s1918_s26 + $0x1c0] sm:$0xff] }
  0x95   : > { %788 = vmatprep.mubr.f32.mxu1 %v255_v52  ;;  %1433 = vmatprep.subr.bf16.mxu0 %v1772_v0  ;;  %v258_v52 = vld [vmem:[%s1918_s26 + $0x198] sm:$0xff] }
  0x96   : > { %524 = vmatmul.mubr.f32.gmra.mrb[2].mxu0 %v212_v54  ;;  %1483 = vmatprep.subr.bf16.mxu1 %v1482_v53  ;;  %v299_v54 = vld [vmem:[%s1918_s26 + $0x2e0] sm:$0xff] }
  0x97   : > { %789 = vmatmul.mubr.f32.gmra.mrb[2].mxu1 %v254_v58  ;;  %528 = vmatprep.mubr.f32.mxu0 %v218_v59  ;;  %v304_v58 = vld [vmem:[%s1918_s26 + $0x308] sm:$0xff] }
  0x98   : > { %793 = vmatprep.mubr.f32.mxu1 %v260_v60  ;;  %1435 = vmatpush1.bf16.msra.mxu0 %v1958_v12  ;;  %v440_v12 = vld [vmem:[%s2661_s1 + $0x248] sm:$0xff]  ;;  %v310_v60 = vld [vmem:[%s1918_s26 + $0x338] sm:$0xff] }
  0x99   : > { %1485 = vmatpush3.bf16.msra.mxu1 %v1482_v53  ;;  %1436 = vmatprep.subr.bf16.mxu0 %v1772_v0  ;;  %v1494_v15 = vpack.c.bf16 %v440_v12, %v439_v9  ;;  %v300_v53 = vld [vmem:[%s1918_s26 + $0x2e8] sm:$0xff] }
  0x9a   : > { %529 = vmatmul.mubr.f32.gmra.mrb[4].mxu0 %v217_v61  ;;  %1487 = vmatprep.subr.bf16.mxu1 %v1486_v8  ;;  %v268_v59 = vld [vmem:[%s1918_s26 + $0x1e8] sm:$0xff]  ;;  %v273_v61 = vld [vmem:[%s1918_s26 + $0x210] sm:$0xff] }
  0x9b   : > { %794 = vmatmul.mubr.f32.gmra.mrb[4].mxu1 %v259_v2  ;;  %533 = vmatprep.mubr.f32.mxu0 %v223_v3  ;;  %v278_v2 = vld [vmem:[%s1918_s26 + $0x238] sm:$0xff]  ;;  %v320_v3 = vld [vmem:[%s1918_s26 + $0x388] sm:$0xff] }
  0x9c   : > { %798 = vmatprep.mubr.f32.mxu1 %v265_v4  ;;  %1438 = vmatpush1.bf16.msra.mxu0 %v1975_v18  ;;  %v442_v18 = vld [vmem:[%s2661_s1 + $0x258] sm:$0xff]  ;;  %v319_v4 = vld [vmem:[%s1918_s26 + $0x380] sm:$0xff]  ;;  %v324_v9 = vld [vmem:[%s1918_s26 + $0x3a8] sm:$0xff] }
  0x9d   : > { %1439 = vmatprep.subr.bf16.mxu0 %v1772_v0  ;;  %1489 = vmatpush3.bf16.msra.mxu1 %v1486_v8  ;;  %v1498_v23 = vpack.c.bf16 %v442_v18, %v441_v17  ;;  %v309_v8 = vld [vmem:[%s1918_s26 + $0x330] sm:$0xff]  ;;  %v288_v12 = vld [vmem:[%s1918_s26 + $0x288] sm:$0xff] }
  0x9e   : > { %534 = vmatmul.mubr.f32.gmra.mrb[6].mxu0 %v222_v7  ;;  %1491 = vmatprep.subr.bf16.mxu1 %v1490_v6  ;;  %v325_v7 = vld [vmem:[%s1918_s26 + $0x3b0] sm:$0xff]  ;;  %v340_v17 = vld [vmem:[%s1918_s26 + $0x428] sm:$0xff] }
  0x9f   : > { %799 = vmatmul.mubr.f32.gmra.mrb[6].mxu1 %v264_v10  ;;  %538 = vmatprep.mubr.f32.mxu0 %v228_v11  ;;  %v330_v10 = vld [vmem:[%s1918_s26 + $0x3d8] sm:$0xff]  ;;  %v329_v11 = vld [vmem:[%s1918_s26 + $0x3d0] sm:$0xff] }
  0xa0   : > { %803 = vmatprep.mubr.f32.mxu1 %v270_v14  ;;  %1441 = vmatpush1.bf16.msra.mxu0 %v1992_v24  ;;  %v444_v24 = vld [vmem:[%s2661_s1 + $0x268] sm:$0xff]  ;;  %v293_v14 = vld [vmem:[%s1918_s26 + $0x2b0] sm:$0xff] }
  0xa1   : > { %1442 = vmatprep.subr.bf16.mxu0 %v1772_v0  ;;  %1493 = vmatpush3.bf16.msra.mxu1 %v1490_v6  ;;  %v1502_v32 = vpack.c.bf16 %v444_v24, %v443_v26  ;;  %v283_v6 = vld [vmem:[%s1918_s26 + $0x260] sm:$0xff]  ;;  %v297_v18 = vld [vmem:[%s1918_s26 + $0x2d0] sm:$0xff]  ;;  %v350_v26 = vld [vmem:[%s1918_s26 + $0x478] sm:$0xff] }
  0xa2   : > { %539 = vmatmul.mubr.f32.gmra.mrb[8].mxu0 %v227_v16  ;;  %1495 = vmatprep.subr.bf16.mxu1 %v1494_v15  ;;  %v298_v16 = vld [vmem:[%s1918_s26 + $0x2d8] sm:$0xff]  ;;  %v307_v24 = vld [vmem:[%s1918_s26 + $0x320] sm:$0xff] }
  0xa3   : > { %804 = vmatmul.mubr.f32.gmra.mrb[8].mxu1 %v269_v19  ;;  %543 = vmatprep.mubr.f32.mxu0 %v233_v21  ;;  %v303_v19 = vld [vmem:[%s1918_s26 + $0x300] sm:$0xff]  ;;  %v345_v21 = vld [vmem:[%s1918_s26 + $0x450] sm:$0xff] }
  0xa4   : > { %808 = vmatprep.mubr.f32.mxu1 %v275_v22  ;;  %1444 = vmatpush1.bf16.msra.mxu0 %v2009_v30  ;;  %v446_v30 = vld [vmem:[%s2661_s1 + $0x278] sm:$0xff] }
  0xa5   : > { %1445 = vmatprep.subr.bf16.mxu0 %v1772_v0  ;;  %1497 = vmatpush3.bf16.msra.mxu1 %v1494_v15  ;;  %v1506_v40 = vpack.c.bf16 %v446_v30, %v445_v35  ;;  %v335_v15 = vld [vmem:[%s1918_s26 + $0x400] sm:$0xff]  ;;  %v302_v22 = vld [vmem:[%s1918_s26 + $0x2f8] sm:$0xff]  ;;  %v360_v30 = vld [vmem:[%s1918_s26 + $0x4c8] sm:$0xff] }
  0xa6   : > { %544 = vmatmul.mubr.f32.gmra.mrb[10].mxu0 %v232_v25  ;;  %1499 = vmatprep.subr.bf16.mxu1 %v1498_v23  ;;  %v308_v25 = vld [vmem:[%s1918_s26 + $0x328] sm:$0xff]  ;;  %v318_v35 = vld [vmem:[%s1918_s26 + $0x378] sm:$0xff] }
  0xa7   : > { %809 = vmatmul.mubr.f32.gmra.mrb[10].mxu1 %v274_v28  ;;  %548 = vmatprep.mubr.f32.mxu0 %v238_v29  ;;  %v349_v28 = vld [vmem:[%s1918_s26 + $0x470] sm:$0xff] }
  0xa8   : > { %813 = vmatprep.mubr.f32.mxu1 %v280_v31  ;;  %1447 = vmatpush1.bf16.msra.mxu0 %v2026_v36  ;;  %v290_v36 = vld [vmem:[%s1918_s26 + $0x298] sm:$0xff]  ;;  %v313_v29 = vld [vmem:[%s1918_s26 + $0x350] sm:$0xff]  ;;  %v355_v31 = vld [vmem:[%s1918_s26 + $0x4a0] sm:$0xff] }
  0xa9   : > { %1448 = vmatprep.subr.bf16.mxu0 %v1772_v0  ;;  %1501 = vmatpush3.bf16.msra.mxu1 %v1498_v23  ;;  %v344_v23 = vld [vmem:[%s1918_s26 + $0x448] sm:$0xff] }
  0xaa   : > { %549 = vmatmul.mubr.f32.gmra.mrb[12].mxu0 %v237_v33  ;;  %1503 = vmatprep.subr.bf16.mxu1 %v1502_v32  ;;  %v354_v33 = vld [vmem:[%s1918_s26 + $0x498] sm:$0xff] }
  0xab   : > { %814 = vmatmul.mubr.f32.gmra.mrb[12].mxu1 %v279_v37  ;;  %553 = vmatprep.mubr.f32.mxu0 %v243_v38  ;;  %v317_v37 = vld [vmem:[%s1918_s26 + $0x370] sm:$0xff]  ;;  %v359_v38 = vld [vmem:[%s1918_s26 + $0x4c0] sm:$0xff] }
  0xac   : > { %818 = vmatprep.mubr.f32.mxu1 %v285_v39  ;;  %1450 = vmatpush1.bf16.msra.mxu0 %v2045_v44  ;;  %v252_v44 = vld [vmem:[%s1918_s26 + $0x168] sm:$0xff]  ;;  %v323_v39 = vld [vmem:[%s1918_s26 + $0x3a0] sm:$0xff] }
  0xad   : > { %1451 = vmatprep.subr.bf16.mxu0 %v1772_v0  ;;  %1505 = vmatpush3.bf16.msra.mxu1 %v1502_v32  ;;  %v312_v32 = vld [vmem:[%s1918_s26 + $0x348] sm:$0xff] }
  0xae   : > { %554 = vmatmul.mubr.f32.gmra.mrb[14].mxu0 %v242_v41  ;;  %1507 = vmatprep.subr.bf16.mxu1 %v1506_v40  ;;  %v322_v41 = vld [vmem:[%s1918_s26 + $0x398] sm:$0xff] }
  0xaf   : > { %819 = vmatmul.mubr.f32.gmra.mrb[14].mxu1 %v284_v42  ;;  %558 = vmatprep.mubr.f32.mxu0 %v248_v45  ;;  %v364_v42 = vld [vmem:[%s1918_s26 + $0x4e8] sm:$0xff] }
  0xb0   : > { %823 = vmatprep.mubr.f32.mxu1 %v290_v36  ;;  %1453 = vmatpush1.bf16.msra.mxu0 %v2062_v50  ;;  %v257_v50 = vld [vmem:[%s1918_s26 + $0x190] sm:$0xff]  ;;  %v328_v45 = vld [vmem:[%s1918_s26 + $0x3c8] sm:$0xff]  ;;  %v211_v36 = vld [vmem:[%s1918_s26 + $0x20] sm:$0xff] }
  0xb1   : > { %1454 = vmatprep.subr.bf16.mxu0 %v1772_v0  ;;  %1509 = vmatpush3.bf16.msra.mxu1 %v1506_v40  ;;  %v365_v40 = vld [vmem:[%s1918_s26 + $0x4f0] sm:$0xff] }
  0xb2   : > { %559 = vmatmul.mubr.f32.gmra.mrb[16].mxu0 %v247_v46  ;;  %v327_v46 = vld [vmem:[%s1918_s26 + $0x3c0] sm:$0xff] }
  0xb3   : > { %824 = vmatmul.mubr.f32.gmra.mrb[16].mxu1 %v289_v47  ;;  %563 = vmatprep.mubr.f32.mxu0 %v253_v48  ;;  %v216_v47 = vld [vmem:[%s1918_s26 + $0x48] sm:$0xff]  ;;  %v333_v48 = vld [vmem:[%s1918_s26 + $0x3f0] sm:$0xff] }
  0xb4   : > { %828 = vmatprep.mubr.f32.mxu1 %v295_v49  ;;  %1456 = vmatpush1.bf16.msra.mxu0 %v2079_v56  ;;  %v262_v56 = vld [vmem:[%s1918_s26 + $0x1b8] sm:$0xff]  ;;  %v221_v49 = vld [vmem:[%s1918_s26 + $0x70] sm:$0xff] }
  0xb5   : > { %1457 = vmatprep.subr.bf16.mxu0 %v1772_v0 }
  0xb6   : > { %564 = vmatmul.mubr.f32.gmra.mrb[18].mxu0 %v252_v44  ;;  %v332_v44 = vld [vmem:[%s1918_s26 + $0x3e8] sm:$0xff] }
  0xb7   : > { %829 = vmatmul.mubr.f32.gmra.mrb[18].mxu1 %v294_v51  ;;  %568 = vmatprep.mubr.f32.mxu0 %v258_v52  ;;  %v226_v51 = vld [vmem:[%s1918_s26 + $0x98] sm:$0xff] }
  0xb8   : > { %833 = vmatprep.mubr.f32.mxu1 %v300_v53  ;;  %1459 = vmatpush1.bf16.msra.mxu0 %v2096_v62  ;;  %v267_v62 = vld [vmem:[%s1918_s26 + $0x1e0] sm:$0xff]  ;;  %v338_v52 = vld [vmem:[%s1918_s26 + $0x418] sm:$0xff] }
  0xb9   : > { %1460 = vmatprep.subr.bf16.mxu0 %v1772_v0  ;;  %v231_v53 = vld [vmem:[%s1918_s26 + $0xc0] sm:$0xff] }
  0xba   : > { %569 = vmatmul.mubr.f32.gmra.mrb[20].mxu0 %v257_v50  ;;  %v337_v50 = vld [vmem:[%s1918_s26 + $0x410] sm:$0xff] }
  0xbb   : > { %834 = vmatmul.mubr.f32.gmra.mrb[20].mxu1 %v299_v54  ;;  %573 = vmatprep.mubr.f32.mxu0 %v263_v55  ;;  %v236_v54 = vld [vmem:[%s1918_s26 + $0xe8] sm:$0xff]  ;;  %v343_v55 = vld [vmem:[%s1918_s26 + $0x440] sm:$0xff] }
  0xbc   : > { %838 = vmatprep.mubr.f32.mxu1 %v305_v57  ;;  %1462 = vmatpush1.bf16.msra.mxu0 %v2113_v5  ;;  %v272_v5 = vld [vmem:[%s1918_s26 + $0x208] sm:$0xff]  ;;  %v241_v57 = vld [vmem:[%s1918_s26 + $0x110] sm:$0xff] }
  0xbd   : > { %1463 = vmatprep.subr.bf16.mxu0 %v1772_v0 }
  0xbe   : > { %574 = vmatmul.mubr.f32.gmra.mrb[22].mxu0 %v262_v56  ;;  %v342_v56 = vld [vmem:[%s1918_s26 + $0x438] sm:$0xff] }
  0xbf   : > { %839 = vmatmul.mubr.f32.gmra.mrb[22].mxu1 %v304_v58  ;;  %578 = vmatprep.mubr.f32.mxu0 %v268_v59  ;;  %v246_v58 = vld [vmem:[%s1918_s26 + $0x138] sm:$0xff]  ;;  %v348_v59 = vld [vmem:[%s1918_s26 + $0x468] sm:$0xff] }
  0xc0   : > { %843 = vmatprep.mubr.f32.mxu1 %v310_v60  ;;  %1465 = vmatpush1.bf16.msra.mxu0 %v2130_v13  ;;  %v277_v13 = vld [vmem:[%s1918_s26 + $0x230] sm:$0xff]  ;;  %v251_v60 = vld [vmem:[%s1918_s26 + $0x160] sm:$0xff] }
  0xc1   : > { %1466 = vmatprep.subr.bf16.mxu0 %v1772_v0 }
  0xc2   : > { %579 = vmatmul.mubr.f32.gmra.mrb[24].mxu0 %v267_v62  ;;  %v347_v62 = vld [vmem:[%s1918_s26 + $0x460] sm:$0xff] }
  0xc3   : > { %844 = vmatmul.mubr.f32.gmra.mrb[24].mxu1 %v309_v8  ;;  %583 = vmatprep.mubr.f32.mxu0 %v273_v61  ;;  %v256_v8 = vld [vmem:[%s1918_s26 + $0x188] sm:$0xff]  ;;  %v353_v61 = vld [vmem:[%s1918_s26 + $0x490] sm:$0xff] }
  0xc4   : > { %848 = vmatprep.mubr.f32.mxu1 %v315_v63  ;;  %1468 = vmatpush1.bf16.msra.mxu0 %v2147_v20  ;;  %v282_v20 = vld [vmem:[%s1918_s26 + $0x258] sm:$0xff]  ;;  %v261_v63 = vld [vmem:[%s1918_s26 + $0x1b0] sm:$0xff] }
  0xc5   : > { %1469 = vmatprep.subr.bf16.mxu0 %v1772_v0 }
  0xc6   : > { %584 = vmatmul.mubr.f32.gmra.mrb[26].mxu0 %v272_v5  ;;  %v352_v5 = vld [vmem:[%s1918_s26 + $0x488] sm:$0xff] }
  0xc7   : > { %849 = vmatmul.mubr.f32.gmra.mrb[26].mxu1 %v314_v1  ;;  %588 = vmatprep.mubr.f32.mxu0 %v278_v2  ;;  %v266_v1 = vld [vmem:[%s1918_s26 + $0x1d8] sm:$0xff] }
  0xc8   : > { %853 = vmatprep.mubr.f32.mxu1 %v320_v3  ;;  %1471 = vmatpush1.bf16.msra.mxu0 %v2164_v27  ;;  %v287_v27 = vld [vmem:[%s1918_s26 + $0x280] sm:$0xff]  ;;  %v358_v2 = vld [vmem:[%s1918_s26 + $0x4b8] sm:$0xff] }
  0xc9   : > { %1472 = vmatprep.subr.bf16.mxu0 %v1772_v0  ;;  %v271_v3 = vld [vmem:[%s1918_s26 + $0x200] sm:$0xff] }
  0xca   : > { %589 = vmatmul.mubr.f32.gmra.mrb[28].mxu0 %v277_v13  ;;  %v357_v13 = vld [vmem:[%s1918_s26 + $0x4b0] sm:$0xff] }
  0xcb   : > { %854 = vmatmul.mubr.f32.gmra.mrb[28].mxu1 %v319_v4  ;;  %593 = vmatprep.mubr.f32.mxu0 %v283_v6  ;;  %v276_v4 = vld [vmem:[%s1918_s26 + $0x228] sm:$0xff]  ;;  %v363_v6 = vld [vmem:[%s1918_s26 + $0x4e0] sm:$0xff] }
  0xcc   : > { %858 = vmatprep.mubr.f32.mxu1 %v325_v7  ;;  %1474 = vmatpush1.bf16.msra.mxu0 %v2181_v34  ;;  %v334_v34 = vld [vmem:[%s1918_s26 + $0x3f8] sm:$0xff]  ;;  %v281_v7 = vld [vmem:[%s1918_s26 + $0x250] sm:$0xff] }
  0xcd   : > { %1475 = vmatprep.subr.bf16.mxu0 %v1772_v0  ;;  %v292_v0 = vld [vmem:[%s1918_s26 + $0x2a8] sm:$0xff] }
  0xce   : > { %594 = vmatmul.mubr.f32.gmra.mrb[30].mxu0 %v282_v20  ;;  %v362_v20 = vld [vmem:[%s1918_s26 + $0x4d8] sm:$0xff] }
  0xcf   : > { %859 = vmatmul.mubr.f32.gmra.mrb[30].mxu1 %v324_v9  ;;  %598 = vmatprep.mubr.f32.mxu0 %v288_v12  ;;  %v286_v9 = vld [vmem:[%s1918_s26 + $0x278] sm:$0xff] }
  0xd0   : > { %863 = vmatprep.mubr.f32.mxu1 %v330_v10  ;;  %1477 = vmatpush1.bf16.msra.mxu0 %v2204_v43  ;;  %v339_v43 = vld [vmem:[%s1918_s26 + $0x420] sm:$0xff]  ;;  %v210_v12 = vld [vmem:[%s1918_s26 + $0x18] sm:$0xff] }
  0xd1   : > { %v291_v10 = vld [vmem:[%s1918_s26 + $0x2a0] sm:$0xff] }
  0xd2   : > { %599 = vmatmul.mubr.f32.gmra.mrb[32].mxu0 %v287_v27  ;;  %v209_v27 = vld [vmem:[%s1918_s26 + $0x10] sm:$0xff] }
  0xd3   : > { %864 = vmatmul.mubr.f32.gmra.mrb[32].mxu1 %v329_v11  ;;  %603 = vmatprep.mubr.f32.mxu0 %v293_v14  ;;  %v296_v11 = vld [vmem:[%s1918_s26 + $0x2c8] sm:$0xff]  ;;  %v215_v14 = vld [vmem:[%s1918_s26 + $0x40] sm:$0xff] }
  0xd4   : > { %868 = vmatprep.mubr.f32.mxu1 %v335_v15  ;;  %v301_v15 = vld [vmem:[%s1918_s26 + $0x2f0] sm:$0xff] }
  0xd6   : > { %604 = vmatmul.mubr.f32.gmra.mrb[34].mxu0 %v292_v0  ;;  %v214_v0 = vld [vmem:[%s1918_s26 + $0x38] sm:$0xff] }
  0xd7   : > { %869 = vmatmul.mubr.f32.gmra.mrb[34].mxu1 %v334_v34  ;;  %608 = vmatprep.mubr.f32.mxu0 %v298_v16  ;;  %v306_v34 = vld [vmem:[%s1918_s26 + $0x318] sm:$0xff]  ;;  %v220_v16 = vld [vmem:[%s1918_s26 + $0x68] sm:$0xff] }
  0xd8   : > { %873 = vmatprep.mubr.f32.mxu1 %v340_v17  ;;  %v311_v17 = vld [vmem:[%s1918_s26 + $0x340] sm:$0xff] }
  0xda   : > { %609 = vmatmul.mubr.f32.gmra.mrb[36].mxu0 %v297_v18  ;;  %v219_v18 = vld [vmem:[%s1918_s26 + $0x60] sm:$0xff] }
  0xdb   : > { %874 = vmatmul.mubr.f32.gmra.mrb[36].mxu1 %v339_v43  ;;  %613 = vmatprep.mubr.f32.mxu0 %v303_v19  ;;  %v316_v43 = vld [vmem:[%s1918_s26 + $0x368] sm:$0xff]  ;;  %v225_v19 = vld [vmem:[%s1918_s26 + $0x90] sm:$0xff] }
  0xdc   : > { %878 = vmatprep.mubr.f32.mxu1 %v345_v21  ;;  %v321_v21 = vld [vmem:[%s1918_s26 + $0x390] sm:$0xff] }
  0xde   : > { %614 = vmatmul.mubr.f32.gmra.mrb[38].mxu0 %v302_v22  ;;  %v224_v22 = vld [vmem:[%s1918_s26 + $0x88] sm:$0xff] }
  0xdf   : > { %879 = vmatmul.mubr.f32.gmra.mrb[38].mxu1 %v344_v23  ;;  %618 = vmatprep.mubr.f32.mxu0 %v308_v25  ;;  %v326_v23 = vld [vmem:[%s1918_s26 + $0x3b8] sm:$0xff] }
  0xe0   : > { %883 = vmatprep.mubr.f32.mxu1 %v350_v26  ;;  %v230_v25 = vld [vmem:[%s1918_s26 + $0xb8] sm:$0xff]  ;;  %v331_v26 = vld [vmem:[%s1918_s26 + $0x3e0] sm:$0xff] }
  0xe2   : > { %619 = vmatmul.mubr.f32.gmra.mrb[40].mxu0 %v307_v24  ;;  %v229_v24 = vld [vmem:[%s1918_s26 + $0xb0] sm:$0xff] }
  0xe3   : > { %884 = vmatmul.mubr.f32.gmra.mrb[40].mxu1 %v349_v28  ;;  %623 = vmatprep.mubr.f32.mxu0 %v313_v29  ;;  %v336_v28 = vld [vmem:[%s1918_s26 + $0x408] sm:$0xff]  ;;  %v235_v29 = vld [vmem:[%s1918_s26 + $0xe0] sm:$0xff] }
  0xe4   : > { %888 = vmatprep.mubr.f32.mxu1 %v355_v31  ;;  %v341_v31 = vld [vmem:[%s1918_s26 + $0x430] sm:$0xff] }
  0xe6   : > { %624 = vmatmul.mubr.f32.gmra.mrb[42].mxu0 %v312_v32  ;;  %v234_v32 = vld [vmem:[%s1918_s26 + $0xd8] sm:$0xff] }
  0xe7   : > { %889 = vmatmul.mubr.f32.gmra.mrb[42].mxu1 %v354_v33  ;;  %628 = vmatprep.mubr.f32.mxu0 %v318_v35  ;;  %v346_v33 = vld [vmem:[%s1918_s26 + $0x458] sm:$0xff]  ;;  %v240_v35 = vld [vmem:[%s1918_s26 + $0x108] sm:$0xff] }
  0xe8   : > { %893 = vmatprep.mubr.f32.mxu1 %v360_v30  ;;  %v351_v30 = vld [vmem:[%s1918_s26 + $0x480] sm:$0xff] }
  0xea   : > { %629 = vmatmul.mubr.f32.gmra.mrb[44].mxu0 %v317_v37  ;;  %v239_v37 = vld [vmem:[%s1918_s26 + $0x100] sm:$0xff] }
  0xeb   : > { %894 = vmatmul.mubr.f32.gmra.mrb[44].mxu1 %v359_v38  ;;  %633 = vmatprep.mubr.f32.mxu0 %v323_v39  ;;  %v356_v38 = vld [vmem:[%s1918_s26 + $0x4a8] sm:$0xff]  ;;  %v245_v39 = vld [vmem:[%s1918_s26 + $0x130] sm:$0xff] }
  0xec   : > { %898 = vmatprep.mubr.f32.mxu1 %v365_v40  ;;  %v361_v40 = vld [vmem:[%s1918_s26 + $0x4d0] sm:$0xff] }
  0xee   : > { %634 = vmatmul.mubr.f32.gmra.mrb[46].mxu0 %v322_v41  ;;  %v244_v41 = vld [vmem:[%s1918_s26 + $0x128] sm:$0xff] }
  0xef   : > { %899 = vmatmul.mubr.f32.gmra.mrb[46].mxu1 %v364_v42  ;;  %638 = vmatprep.mubr.f32.mxu0 %v328_v45  ;;  %v366_v42 = vld [vmem:[%s1918_s26 + $0x4f8] sm:$0xff]  ;;  %s1249_s26 = sshll.u32 %s1239_s16, 5 }
  0xf0   : > { %1334 = vmatprep.mubr.f32.mxu1 %v211_v36  ;;  %p202_p8 = scmp.lt.s32.totalorder %s1249_s26, 63 }
  0xf2   : > { %639 = vmatmul.mubr.f32.gmra.mrb[48].mxu0 %v327_v46  ;;  %s2684_s26 = smov (!%p202_p8, %s1249_s26), 63 }
  0xf3   : > { %1335 = vmatmul.mubr.f32.vlgmr.msra.gmra.mrb[48].mxu1 %v216_v47  ;;  %643 = vmatprep.mubr.f32.mxu0 %v333_v48  ;;  %s1250_s15 = sshll.u32 %s2684_s26, 3 }
  0xf4   : > { %1337 = vmatprep.mubr.f32.mxu1 %v221_v49  ;;  %s2528_s29 = scalar_lea.vmem %s2663_s3, %s1250_s15 }
  0xf6   : > { %644 = vmatmul.mubr.f32.gmra.mrb[50].mxu0 %v332_v44 }
  0xf7   : > { %1338 = vmatmul.mubr.f32.gmra.mrb[50].mxu1 %v226_v51  ;;  %648 = vmatprep.mubr.f32.mxu0 %v338_v52 }
  0xf8   : > { %1340 = vmatprep.mubr.f32.mxu1 %v231_v53 }
  0xfa   : > { %649 = vmatmul.mubr.f32.gmra.mrb[52].mxu0 %v337_v50 }
  0xfb   : > { %1341 = vmatmul.mubr.f32.gmra.mrb[52].mxu1 %v236_v54  ;;  %653 = vmatprep.mubr.f32.mxu0 %v343_v55 }
  0xfc   : > { %1343 = vmatprep.mubr.f32.mxu1 %v241_v57 }
  0xfe   : > { %654 = vmatmul.mubr.f32.gmra.mrb[54].mxu0 %v342_v56 }
  0xff   : > { %1344 = vmatmul.mubr.f32.gmra.mrb[54].mxu1 %v246_v58  ;;  %658 = vmatprep.mubr.f32.mxu0 %v348_v59  ;;  %v2440_v59 = vld [vmem:[#allocation4] ss:$0 sm:$0xff] }
 0x100   : > { %1346 = vmatprep.mubr.f32.mxu1 %v251_v60 }
 0x102   : > { %659 = vmatmul.mubr.f32.gmra.mrb[56].mxu0 %v347_v62 }
 0x103   : > { %1347 = vmatmul.mubr.f32.gmra.mrb[56].mxu1 %v256_v8  ;;  %663 = vmatprep.mubr.f32.mxu0 %v353_v61 }
 0x104   : > { %1349 = vmatprep.mubr.f32.mxu1 %v261_v63 }
 0x106   : > { %664 = vmatmul.mubr.f32.gmra.mrb[58].mxu0 %v352_v5 }
 0x107   : > { %1350 = vmatmul.mubr.f32.gmra.mrb[58].mxu1 %v266_v1  ;;  %668 = vmatprep.mubr.f32.mxu0 %v358_v2 }
 0x108   : > { %1352 = vmatprep.mubr.f32.mxu1 %v271_v3 }
 0x10a   : > { %669 = vmatmul.mubr.f32.gmra.mrb[60].mxu0 %v357_v13 }
 0x10b   : > { %1353 = vmatmul.mubr.f32.gmra.mrb[60].mxu1 %v276_v4  ;;  %673 = vmatprep.mubr.f32.mxu0 %v363_v6 }
 0x10c   : > { %1355 = vmatprep.mubr.f32.mxu1 %v281_v7 }
 0x10e   : > { %674 = vmatmul.mubr.f32.gmra.mrb[62].mxu0 %v362_v20 }
 0x10f   : > { %1356 = vmatmul.mubr.f32.gmra.mrb[62].mxu1 %v286_v9  ;;  %743 = vmatprep.mubr.f32.mxu0 %v210_v12 }
 0x110   : > { %1358 = vmatprep.mubr.f32.mxu1 %v291_v10 }
 0x112   : > { %744 = vmatmul.mubr.f32.vlgmr.msra.gmra.mrb[0].mxu0 %v209_v27 }
 0x113   : > { %1359 = vmatmul.mubr.f32.gmra.mrb[64].mxu1 %v296_v11  ;;  %748 = vmatprep.mubr.f32.mxu0 %v215_v14 }
 0x114   : > { %1361 = vmatprep.mubr.f32.mxu1 %v301_v15 }
 0x116   : > { %749 = vmatmul.mubr.f32.gmra.mrb[2].mxu0 %v214_v0 }
 0x117   : > { %1362 = vmatmul.mubr.f32.gmra.mrb[66].mxu1 %v306_v34  ;;  %753 = vmatprep.mubr.f32.mxu0 %v220_v16 }
 0x118   : > { %1364 = vmatprep.mubr.f32.mxu1 %v311_v17 }
 0x11a   : > { %754 = vmatmul.mubr.f32.gmra.mrb[4].mxu0 %v219_v18 }
 0x11b   : > { %1365 = vmatmul.mubr.f32.gmra.mrb[68].mxu1 %v316_v43  ;;  %758 = vmatprep.mubr.f32.mxu0 %v225_v19 }
 0x11c   : > { %1367 = vmatprep.mubr.f32.mxu1 %v321_v21 }
 0x11e   : > { %759 = vmatmul.mubr.f32.gmra.mrb[6].mxu0 %v224_v22 }
 0x11f   : > { %1368 = vmatmul.mubr.f32.gmra.mrb[70].mxu1 %v326_v23  ;;  %763 = vmatprep.mubr.f32.mxu0 %v230_v25 }
 0x120   : > { %1370 = vmatprep.mubr.f32.mxu1 %v331_v26 }
 0x122   : > { %764 = vmatmul.mubr.f32.gmra.mrb[8].mxu0 %v229_v24 }
 0x123   : > { %1371 = vmatmul.mubr.f32.gmra.mrb[72].mxu1 %v336_v28  ;;  %768 = vmatprep.mubr.f32.mxu0 %v235_v29 }
 0x124   : > { %1373 = vmatprep.mubr.f32.mxu1 %v341_v31 }
 0x126   : > { %769 = vmatmul.mubr.f32.gmra.mrb[10].mxu0 %v234_v32 }
 0x127   : > { %1374 = vmatmul.mubr.f32.gmra.mrb[74].mxu1 %v346_v33  ;;  %773 = vmatprep.mubr.f32.mxu0 %v240_v35 }
 0x128   : > { %1376 = vmatprep.mubr.f32.mxu1 %v351_v30 }
 0x12a   : > { %774 = vmatmul.mubr.f32.gmra.mrb[12].mxu0 %v239_v37 }
 0x12b   : > { %1377 = vmatmul.mubr.f32.gmra.mrb[76].mxu1 %v356_v38  ;;  %778 = vmatprep.mubr.f32.mxu0 %v245_v39 }
 0x12c   : > { %1379 = vmatprep.mubr.f32.mxu1 %v361_v40 }
 0x12e   : > { %779 = vmatmul.mubr.f32.gmra.mrb[14].mxu0 %v244_v41 }
 0x12f   : > { %1380 = vmatmul.mubr.f32.gmra.mrb[78].mxu1 %v366_v42 }
 0x166   : > { %v785_v45 = vpop.f32.mrb[0].mxu1 }
 0x167   : > { %v787_v36 = vpop.f32.mrb[1].mxu1 }
 0x16a   : > { %v790_v46 = vpop.f32.mrb[2].mxu1 }
 0x16b   : > { %v792_v47 = vpop.f32.mrb[3].mxu1 }
 0x16e   : > { %v795_v48 = vpop.f32.mrb[4].mxu1 }
 0x16f   : > { %v797_v49 = vpop.f32.mrb[5].mxu1 }
 0x172   : > { %v800_v44 = vpop.f32.mrb[6].mxu1 }
 0x173   : > { %v802_v51 = vpop.f32.mrb[7].mxu1 }
 0x176   : > { %v805_v52 = vpop.f32.mrb[8].mxu1 }
 0x177   : > { %v807_v53 = vpop.f32.mrb[9].mxu1 }
 0x17a   : > { %v810_v50 = vpop.f32.mrb[10].mxu1 }
 0x17b   : > { %v812_v54 = vpop.f32.mrb[11].mxu1 }
 0x17e   : > { %v815_v55 = vpop.f32.mrb[12].mxu1 }
 0x17f   : > { %v817_v57 = vpop.f32.mrb[13].mxu1 }
 0x182   : > { %v820_v56 = vpop.f32.mrb[14].mxu1 }
 0x183   : > { %v822_v58 = vpop.f32.mrb[15].mxu1 }
 0x185   : > { %v560_v60 = vpop.f32.mrb[16].mxu0 }
 0x186   : > { %v561_v62 = vadd.f32 %v2440_v59, %v560_v60  ;;  %v562_v8 = vpop.f32.mrb[17].mxu0  ;;  %v825_v61 = vpop.f32.mrb[16].mxu1 }
 0x187   : > { %v827_v63 = vpop.f32.mrb[17].mxu1 }
 0x188   : > { %v2443_v5 = vadd.f32 %v785_v45, %v561_v62 }
 0x189   : > { %v565_v1 = vpop.f32.mrb[18].mxu0 }
 0x18a   : > { %v566_v2 = vadd.f32 %v2440_v59, %v565_v1  ;;  %v567_v3 = vpop.f32.mrb[19].mxu0  ;;  %v830_v13 = vpop.f32.mrb[18].mxu1 }
 0x18b   : > { %v832_v4 = vpop.f32.mrb[19].mxu1 }
 0x18c   : > { %v2446_v6 = vadd.f32 %v790_v46, %v566_v2 }
 0x18d   : > { %v570_v7 = vpop.f32.mrb[20].mxu0 }
 0x18e   : > { %v571_v20 = vadd.f32 %v2440_v59, %v570_v7  ;;  %v572_v9 = vpop.f32.mrb[21].mxu0  ;;  %v835_v12 = vpop.f32.mrb[20].mxu1 }
 0x18f   : > { %v837_v10 = vpop.f32.mrb[21].mxu1 }
 0x190   : > { %v2449_v27 = vadd.f32 %v795_v48, %v571_v20 }
 0x191   : > { %v575_v11 = vpop.f32.mrb[22].mxu0 }
 0x192   : > { %v576_v14 = vadd.f32 %v2440_v59, %v575_v11  ;;  %v577_v15 = vpop.f32.mrb[23].mxu0  ;;  %v840_v0 = vpop.f32.mrb[22].mxu1 }
 0x193   : > { %v842_v34 = vpop.f32.mrb[23].mxu1 }
 0x194   : > { %v2452_v16 = vadd.f32 %v800_v44, %v576_v14 }
 0x195   : > { %v580_v17 = vpop.f32.mrb[24].mxu0 }
 0x196   : > { %v581_v18 = vadd.f32 %v2440_v59, %v580_v17  ;;  %v582_v43 = vpop.f32.mrb[25].mxu0  ;;  %v845_v19 = vpop.f32.mrb[24].mxu1 }
 0x197   : > { %v847_v21 = vpop.f32.mrb[25].mxu1 }
 0x198   : > { %v2455_v22 = vadd.f32 %v805_v52, %v581_v18 }
 0x199   : > { %v585_v23 = vpop.f32.mrb[26].mxu0 }
 0x19a   : > { %v586_v25 = vadd.f32 %v2440_v59, %v585_v23  ;;  %v587_v26 = vpop.f32.mrb[27].mxu0  ;;  %v850_v24 = vpop.f32.mrb[26].mxu1 }
 0x19b   : > { %v852_v28 = vpop.f32.mrb[27].mxu1 }
 0x19c   : > { %v2458_v29 = vadd.f32 %v810_v50, %v586_v25 }
 0x19d   : > { %v590_v31 = vpop.f32.mrb[28].mxu0 }
 0x19e   : > { %v591_v32 = vadd.f32 %v2440_v59, %v590_v31  ;;  %v592_v33 = vpop.f32.mrb[29].mxu0  ;;  %v855_v35 = vpop.f32.mrb[28].mxu1 }
 0x19f   : > { %v857_v30 = vpop.f32.mrb[29].mxu1 }
 0x1a0   : > { %v2461_v37 = vadd.f32 %v815_v55, %v591_v32 }
 0x1a1   : > { %v595_v38 = vpop.f32.mrb[30].mxu0 }
 0x1a2   : > { %v596_v39 = vadd.f32 %v2440_v59, %v595_v38  ;;  %v597_v40 = vpop.f32.mrb[31].mxu0  ;;  %v860_v41 = vpop.f32.mrb[30].mxu1 }
 0x1a3   : > { %v862_v42 = vpop.f32.mrb[31].mxu1 }
 0x1a4   : > { %v2464_v45 = vadd.f32 %v820_v56, %v596_v39 }
 0x1a5   : > { %v600_v36 = vpop.f32.mrb[32].mxu0 }
 0x1a6   : > { %v601_v46 = vadd.f32 %v2440_v59, %v600_v36  ;;  %v602_v47 = vpop.f32.mrb[33].mxu0  ;;  %v865_v48 = vpop.f32.mrb[32].mxu1 }
 0x1a7   : > { %v867_v49 = vpop.f32.mrb[33].mxu1 }
 0x1a8   : > { %v2467_v44 = vadd.f32 %v825_v61, %v601_v46 }
 0x1a9   : > { %v605_v51 = vpop.f32.mrb[34].mxu0 }
 0x1aa   : > { %v606_v52 = vadd.f32 %v2440_v59, %v605_v51  ;;  %v607_v53 = vpop.f32.mrb[35].mxu0  ;;  %v870_v50 = vpop.f32.mrb[34].mxu1 }
 0x1ab   : > { %v872_v54 = vpop.f32.mrb[35].mxu1 }
 0x1ac   : > { %v2470_v55 = vadd.f32 %v830_v13, %v606_v52 }
 0x1ad   : > { %v610_v57 = vpop.f32.mrb[36].mxu0 }
 0x1ae   : > { %v611_v56 = vadd.f32 %v2440_v59, %v610_v57  ;;  %v612_v58 = vpop.f32.mrb[37].mxu0  ;;  %v875_v60 = vpop.f32.mrb[36].mxu1 }
 0x1af   : > { %v877_v62 = vpop.f32.mrb[37].mxu1 }
 0x1b0   : > { %v2473_v8 = vadd.f32 %v835_v12, %v611_v56 }
 0x1b1   : > { %v615_v63 = vpop.f32.mrb[38].mxu0 }
 0x1b2   : > { %v616_v61 = vadd.f32 %v2440_v59, %v615_v63  ;;  %v617_v1 = vpop.f32.mrb[39].mxu0  ;;  %v880_v2 = vpop.f32.mrb[38].mxu1 }
 0x1b3   : > { %v882_v3 = vpop.f32.mrb[39].mxu1 }
 0x1b4   : > { %v2476_v4 = vadd.f32 %v840_v0, %v616_v61 }
 0x1b5   : > { %v620_v7 = vpop.f32.mrb[40].mxu0 }
 0x1b6   : > { %v621_v13 = vadd.f32 %v2440_v59, %v620_v7  ;;  %v622_v20 = vpop.f32.mrb[41].mxu0  ;;  %v885_v9 = vpop.f32.mrb[40].mxu1 }
 0x1b7   : > { %v887_v10 = vpop.f32.mrb[41].mxu1 }
 0x1b8   : > { %v2479_v11 = vadd.f32 %v845_v19, %v621_v13 }
 0x1b9   : > { %v625_v14 = vpop.f32.mrb[42].mxu0 }
 0x1ba   : > { %v626_v12 = vadd.f32 %v2440_v59, %v625_v14  ;;  %v627_v15 = vpop.f32.mrb[43].mxu0  ;;  %v890_v34 = vpop.f32.mrb[42].mxu1 }
 0x1bb   : > { %v892_v17 = vpop.f32.mrb[43].mxu1 }
 0x1bc   : > { %v2482_v18 = vadd.f32 %v850_v24, %v626_v12 }
 0x1bd   : > { %v630_v43 = vpop.f32.mrb[44].mxu0 }
 0x1be   : > { %v631_v0 = vadd.f32 %v2440_v59, %v630_v43  ;;  %v632_v21 = vpop.f32.mrb[45].mxu0  ;;  %v2485_v23 = vpop.f32.mrb[44].mxu1 }
 0x1bf   : > { %v897_v25 = vpop.f32.mrb[45].mxu1 }
 0x1c0   : > { %v2487_v26 = vadd.f32 %v855_v35, %v631_v0 }
 0x1c1   : > { %v635_v19 = vpop.f32.mrb[46].mxu0 }
 0x1c2   : > { %v636_v28 = vadd.f32 %v2440_v59, %v635_v19  ;;  %v637_v31 = vpop.f32.mrb[47].mxu0  ;;  %v2490_v32 = vpop.f32.mrb[46].mxu1 }
 0x1c3   : > { %v902_v33 = vpop.f32.mrb[47].mxu1 }
 0x1c4   : > { %v2492_v30 = vadd.f32 %v860_v41, %v636_v28 }
 0x1c5   : > { %v640_v24 = vpop.f32.mrb[48].mxu0 }
 0x1c6   : > { %v641_v38 = vadd.f32 %v2440_v59, %v640_v24  ;;  %v642_v39 = vpop.f32.mrb[49].mxu0  ;;  %v2495_v40 = vpop.f32.mrb[48].mxu1 }
 0x1c7   : > { %v2497_v42 = vpop.f32.mrb[49].mxu1 }
 0x1c8   : > { %v2501_v35 = vadd.f32 %v865_v48, %v641_v38 }
 0x1c9   : > { %v645_v36 = vpop.f32.mrb[50].mxu0 }
 0x1ca   : > { %v646_v46 = vadd.f32 %v2440_v59, %v645_v36  ;;  %v647_v47 = vpop.f32.mrb[51].mxu0  ;;  %v2504_v49 = vpop.f32.mrb[50].mxu1 }
 0x1cb   : > { %v2506_v41 = vpop.f32.mrb[51].mxu1 }
 0x1cc   : > { %v2508_v51 = vadd.f32 %v870_v50, %v646_v46 }
 0x1cd   : > { %v650_v52 = vpop.f32.mrb[52].mxu0 }
 0x1ce   : > { %v651_v53 = vadd.f32 %v2440_v59, %v650_v52  ;;  %v652_v54 = vpop.f32.mrb[53].mxu0  ;;  %v2511_v57 = vpop.f32.mrb[52].mxu1 }
 0x1cf   : > { %v2513_v56 = vpop.f32.mrb[53].mxu1 }
 0x1d0   : > { %v2515_v48 = vadd.f32 %v875_v60, %v651_v53 }
 0x1d1   : > { %v655_v58 = vpop.f32.mrb[54].mxu0 }
 0x1d2   : > { %v656_v62 = vadd.f32 %v2440_v59, %v655_v58  ;;  %v657_v63 = vpop.f32.mrb[55].mxu0  ;;  %v2518_v61 = vpop.f32.mrb[54].mxu1 }
 0x1d3   : > { %v2520_v1 = vpop.f32.mrb[55].mxu1 }
 0x1d4   : > { %v2522_v50 = vadd.f32 %v880_v2, %v656_v62 }
 0x1d5   : > { %v660_v3 = vpop.f32.mrb[56].mxu0 }
 0x1d6   : > { %v661_v7 = vadd.f32 %v2440_v59, %v660_v3  ;;  %v1348_v60 = vpop.f32.mrb[56].mxu1  ;;  %v662_v13 = vpop.f32.mrb[57].mxu0 }
 0x1d7   : > { %v1016_v20 = vadd.f32 %v1348_v60, %v2446_v6  ;;  %v1010_v10 = vpop.f32.mrb[57].mxu1 }
 0x1d8   : > { %v1011_v2 = vadd.f32 %v1010_v10, %v2443_v5  ;;  %v2532_v14 = vadd.f32 %v885_v9, %v661_v7 }
 0x1d9   : > { %1139 = vst.msk [vmem:[%s2528_s29 + $0x48] sm:$0xff] %vm1129_vm0, %v1016_v20  ;;  %v665_v12 = vpop.f32.mrb[58].mxu0 }
 0x1da   : > { %1138 = vst.msk [vmem:[%s2528_s29 + $0x40] sm:$0xff] %vm1129_vm0, %v1011_v2  ;;  %v666_v15 = vadd.f32 %v2440_v59, %v665_v12  ;;  %v1351_v17 = vpop.f32.mrb[58].mxu1  ;;  %v667_v43 = vpop.f32.mrb[59].mxu0 }
 0x1db   : > { %v1026_v0 = vadd.f32 %v1351_v17, %v2452_v16  ;;  %v1020_v6 = vpop.f32.mrb[59].mxu1 }
 0x1dc   : > { %v1021_v21 = vadd.f32 %v1020_v6, %v2449_v27  ;;  %v2541_v25 = vadd.f32 %v890_v34, %v666_v15 }
 0x1dd   : > { %1141 = vst.msk [vmem:[%s2528_s29 + $0x58] sm:$0xff] %vm1129_vm0, %v1026_v0  ;;  %v670_v5 = vpop.f32.mrb[60].mxu0 }
 0x1de   : > { %1140 = vst.msk [vmem:[%s2528_s29 + $0x50] sm:$0xff] %vm1129_vm0, %v1021_v21  ;;  %v671_v9 = vadd.f32 %v2440_v59, %v670_v5  ;;  %v1354_v19 = vpop.f32.mrb[60].mxu1  ;;  %v672_v28 = vpop.f32.mrb[61].mxu0 }
 0x1df   : > { %v1036_v31 = vadd.f32 %v1354_v19, %v2458_v29  ;;  %v1030_v16 = vpop.f32.mrb[61].mxu1 }
 0x1e0   : > { %v1031_v33 = vadd.f32 %v1030_v16, %v2455_v22  ;;  %v2551_v27 = vadd.f32 %v2485_v23, %v671_v9 }
 0x1e1   : > { %1143 = vst.msk [vmem:[%s2528_s29 + $0x68] sm:$0xff] %vm1129_vm0, %v1036_v31  ;;  %v675_v34 = vpop.f32.mrb[62].mxu0 }
 0x1e2   : > { %1142 = vst.msk [vmem:[%s2528_s29 + $0x60] sm:$0xff] %vm1129_vm0, %v1031_v33  ;;  %v676_v24 = vadd.f32 %v2440_v59, %v675_v34  ;;  %v1357_v38 = vpop.f32.mrb[62].mxu1  ;;  %v677_v39 = vpop.f32.mrb[63].mxu0 }
 0x1e3   : > { %v1046_v36 = vadd.f32 %v1357_v38, %v2464_v45  ;;  %v1040_v29 = vpop.f32.mrb[63].mxu1 }
 0x1e4   : > { %v1041_v22 = vadd.f32 %v1040_v29, %v2461_v37  ;;  %v2561_v23 = vadd.f32 %v2490_v32, %v676_v24 }
 0x1e5   : > { %1145 = vst.msk [vmem:[%s2528_s29 + $0x78] sm:$0xff] %vm1129_vm0, %v1046_v36  ;;  %v745_v46 = vpop.f32.mrb[0].mxu0 }
 0x1e6   : > { %1144 = vst.msk [vmem:[%s2528_s29 + $0x70] sm:$0xff] %vm1129_vm0, %v1041_v22  ;;  %v1542_v47 = vadd.f32 %v2440_v59, %v745_v46  ;;  %v1360_v52 = vpop.f32.mrb[64].mxu1  ;;  %v747_v53 = vpop.f32.mrb[1].mxu0 }
 0x1e7   : > { %v1056_v45 = vadd.f32 %v1360_v52, %v2470_v55  ;;  %v1050_v54 = vpop.f32.mrb[65].mxu1 }
 0x1e8   : > { %v971_v58 = vadd.f32 %v1542_v47, %v2497_v42  ;;  %v1051_v37 = vadd.f32 %v1050_v54, %v2467_v44 }
 0x1e9   : > { %1147 = vst.msk [vmem:[%s2528_s29 + $0x88] sm:$0xff] %vm1129_vm0, %v1056_v45  ;;  %v750_v32 = vpop.f32.mrb[2].mxu0 }
 0x1ea   : > { %1130 = vst.msk [vmem:[%s2528_s29] sm:$0xff] %vm1129_vm0, %v971_v58  ;;  %1146 = vst.msk [vmem:[%s2528_s29 + $0x80] sm:$0xff] %vm1129_vm0, %v1051_v37  ;;  %v1543_v62 = vadd.f32 %v2440_v59, %v750_v32  ;;  %v1363_v63 = vpop.f32.mrb[66].mxu1  ;;  %v752_v3 = vpop.f32.mrb[3].mxu0 }
 0x1eb   : > { %v1066_v55 = vadd.f32 %v1363_v63, %v2476_v4  ;;  %v1060_v7 = vpop.f32.mrb[67].mxu1 }
 0x1ec   : > { %v976_v42 = vadd.f32 %v1543_v62, %v2495_v40  ;;  %v1061_v44 = vadd.f32 %v1060_v7, %v2473_v8 }
 0x1ed   : > { %1149 = vst.msk [vmem:[%s2528_s29 + $0x98] sm:$0xff] %vm1129_vm0, %v1066_v55  ;;  %v755_v60 = vpop.f32.mrb[4].mxu0 }
 0x1ee   : > { %1131 = vst.msk [vmem:[%s2528_s29 + $0x8] sm:$0xff] %vm1129_vm0, %v976_v42  ;;  %1148 = vst.msk [vmem:[%s2528_s29 + $0x90] sm:$0xff] %vm1129_vm0, %v1061_v44  ;;  %v1544_v13 = vadd.f32 %v2440_v59, %v755_v60  ;;  %v1366_v20 = vpop.f32.mrb[68].mxu1  ;;  %v757_v10 = vpop.f32.mrb[5].mxu0 }
 0x1ef   : > { %v1076_v4 = vadd.f32 %v1366_v20, %v2482_v18  ;;  %v1070_v2 = vpop.f32.mrb[69].mxu1 }
 0x1f0   : > { %v981_v40 = vadd.f32 %v1544_v13, %v2506_v41  ;;  %v1071_v8 = vadd.f32 %v1070_v2, %v2479_v11 }
 0x1f1   : > { %1151 = vst.msk [vmem:[%s2528_s29 + $0xa8] sm:$0xff] %vm1129_vm0, %v1076_v4  ;;  %v760_v12 = vpop.f32.mrb[6].mxu0 }
 0x1f2   : > { %1132 = vst.msk [vmem:[%s2528_s29 + $0x10] sm:$0xff] %vm1129_vm0, %v981_v40  ;;  %1150 = vst.msk [vmem:[%s2528_s29 + $0xa0] sm:$0xff] %vm1129_vm0, %v1071_v8  ;;  %v1545_v15 = vadd.f32 %v2440_v59, %v760_v12  ;;  %v1369_v17 = vpop.f32.mrb[70].mxu1  ;;  %v762_v43 = vpop.f32.mrb[7].mxu0 }
 0x1f3   : > { %v1086_v18 = vadd.f32 %v1369_v17, %v2492_v30  ;;  %v1080_v0 = vpop.f32.mrb[71].mxu1 }
 0x1f4   : > { %v986_v41 = vadd.f32 %v1545_v15, %v2504_v49  ;;  %v1081_v11 = vadd.f32 %v1080_v0, %v2487_v26 }
 0x1f5   : > { %1153 = vst.msk [vmem:[%s2528_s29 + $0xb8] sm:$0xff] %vm1129_vm0, %v1086_v18  ;;  %v765_v6 = vpop.f32.mrb[8].mxu0 }
 0x1f6   : > { %1133 = vst.msk [vmem:[%s2528_s29 + $0x18] sm:$0xff] %vm1129_vm0, %v986_v41  ;;  %1152 = vst.msk [vmem:[%s2528_s29 + $0xb0] sm:$0xff] %vm1129_vm0, %v1081_v11  ;;  %v1546_v21 = vadd.f32 %v2440_v59, %v765_v6  ;;  %v1372_v5 = vpop.f32.mrb[72].mxu1  ;;  %v767_v9 = vpop.f32.mrb[9].mxu0 }
 0x1f7   : > { %v1096_v30 = vadd.f32 %v1372_v5, %v2508_v51  ;;  %v1090_v19 = vpop.f32.mrb[73].mxu1 }
 0x1f8   : > { %v991_v49 = vadd.f32 %v1546_v21, %v2513_v56  ;;  %v1091_v26 = vadd.f32 %v1090_v19, %v2501_v35 }
 0x1f9   : > { %1155 = vst.msk [vmem:[%s2528_s29 + $0xc8] sm:$0xff] %vm1129_vm0, %v1096_v30  ;;  %v770_v28 = vpop.f32.mrb[10].mxu0 }
 0x1fa   : > { %1134 = vst.msk [vmem:[%s2528_s29 + $0x20] sm:$0xff] %vm1129_vm0, %v991_v49  ;;  %1154 = vst.msk [vmem:[%s2528_s29 + $0xc0] sm:$0xff] %vm1129_vm0, %v1091_v26  ;;  %v1547_v31 = vadd.f32 %v2440_v59, %v770_v28  ;;  %v1375_v16 = vpop.f32.mrb[74].mxu1  ;;  %v772_v33 = vpop.f32.mrb[11].mxu0 }
 0x1fb   : > { %v1106_v51 = vadd.f32 %v1375_v16, %v2522_v50  ;;  %v1100_v34 = vpop.f32.mrb[75].mxu1 }
 0x1fc   : > { %v996_v56 = vadd.f32 %v1547_v31, %v2511_v57  ;;  %v1101_v35 = vadd.f32 %v1100_v34, %v2515_v48 }
 0x1fd   : > { %1157 = vst.msk [vmem:[%s2528_s29 + $0xd8] sm:$0xff] %vm1129_vm0, %v1106_v51  ;;  %v775_v24 = vpop.f32.mrb[12].mxu0 }
 0x1fe   : > { %1135 = vst.msk [vmem:[%s2528_s29 + $0x28] sm:$0xff] %vm1129_vm0, %v996_v56  ;;  %1156 = vst.msk [vmem:[%s2528_s29 + $0xd0] sm:$0xff] %vm1129_vm0, %v1101_v35  ;;  %v1548_v38 = vadd.f32 %v2440_v59, %v775_v24  ;;  %v1378_v39 = vpop.f32.mrb[76].mxu1  ;;  %v777_v36 = vpop.f32.mrb[13].mxu0 }
 0x1ff   : > { %v1116_v50 = vadd.f32 %v1378_v39, %v2541_v25  ;;  %v1110_v29 = vpop.f32.mrb[77].mxu1 }
 0x200   : > { %v1001_v57 = vadd.f32 %v1548_v38, %v2520_v1  ;;  %v1111_v48 = vadd.f32 %v1110_v29, %v2532_v14 }
 0x201   : > { %1159 = vst.msk [vmem:[%s2528_s29 + $0xe8] sm:$0xff] %vm1129_vm0, %v1116_v50  ;;  %v780_v22 = vpop.f32.mrb[14].mxu0 }
 0x202   : > { %1136 = vst.msk [vmem:[%s2528_s29 + $0x30] sm:$0xff] %vm1129_vm0, %v1001_v57  ;;  %1158 = vst.msk [vmem:[%s2528_s29 + $0xe0] sm:$0xff] %vm1129_vm0, %v1111_v48  ;;  %v1549_v46 = vadd.f32 %v2440_v59, %v780_v22  ;;  %v1381_v47 = vpop.f32.mrb[78].mxu1  ;;  %v782_v52 = vpop.f32.mrb[15].mxu0 }
 0x203   : > { %v1126_v25 = vadd.f32 %v1381_v47, %v2561_v23  ;;  %v1120_v53 = vpop.f32.mrb[79].mxu1 }
 0x204   : > { %v1006_v45 = vadd.f32 %v1549_v46, %v2518_v61  ;;  %v1121_v1 = vadd.f32 %v1120_v53, %v2551_v27 }
 0x205   : > { %1161 = vst.msk [vmem:[%s2528_s29 + $0xf8] sm:$0xff] %vm1129_vm0, %v1126_v25 }
 0x206   : > { %1137 = vst.msk [vmem:[%s2528_s29 + $0x38] sm:$0xff] %vm1129_vm0, %v1006_v45  ;;  %1160 = vst.msk [vmem:[%s2528_s29 + $0xf0] sm:$0xff] %vm1129_vm0, %v1121_v1 }
 0x207 PF: > { %p14_p3 = scmp.ge.s32.totalorder %s1813_s17, 4   ;;  %s2679_s12 = smov %s1758_s13 }
 0x208   : > { %s2680_s13 = smov %s1762_s14  ;;  %s2681_s14 = smov %s1823_s20 }
 0x209   : > { %s2682_s15 = smov %s1813_s17  ;;  %16 = sbr.rel (!%p14_p3) target bundleno = 4 (0x4), region = 76 }
 0x210   :  { %1184 = vsyncpa [#allocation3], 1 }
 0x211   :  { %1186 = vsyncpa [#allocation3 + $0x1], 1 }
 0x212   :  { %1187 = vsyncpa [#allocation5], 1 }

</bundles_post_ra>
